<compile_context>
chip_gen: v6e
topology: v6e:2x2x1
jax: 0.10.0
libtpu: 0.0.40
codegen_flags: <defaults>
</compile_context>

<pallas_src>
import functools
import inspect

import jax
import jax.numpy as jnp
from jax import lax
from jax.experimental import pallas as pl
from jax.experimental.pallas import tpu as pltpu


# --------------------------------------------------------------------------- #
# Kernel
# --------------------------------------------------------------------------- #
def _mha_kernel(q_ref, k_ref, v_ref,
                wqT_ref, bq_ref, wkT_ref, bk_ref, wvT_ref, bv_ref,
                woT_ref, bo_ref,
                out_ref,
                k_cache, v_cache, *, n_heads: int):
    # Block views: q/out are (1, TQ, C); raw k/v are (1, S, C); weights (C, C)
    # in the MXU compute dtype; biases (1, C) f32; k_cache/v_cache are (S, C)
    # persistent VMEM scratch in the compute dtype.
    C = q_ref.shape[2]
    hd = C // n_heads
    scale = hd ** (-0.5)
    cdt = wqT_ref.dtype  # MXU operand dtype (bf16 by default, f32 optional)

    # ---- once per batch: project K and V into persistent VMEM scratch ------
    @pl.when(pl.program_id(1) == 0)
    def _project_kv():
        kin = k_ref[0].astype(cdt)                                  # (S, C)
        vin = v_ref[0].astype(cdt)
        K = jnp.dot(kin, wkT_ref[...],
                    preferred_element_type=jnp.float32) + bk_ref[...]
        V = jnp.dot(vin, wvT_ref[...],
                    preferred_element_type=jnp.float32) + bv_ref[...]
        k_cache[...] = K.astype(cdt)      # lane-dense (S, C) stores
        v_cache[...] = V.astype(cdt)

    # ---- per query tile -----------------------------------------------------
    qin = q_ref[0].astype(cdt)                                      # (TQ, C)
    Q = jnp.dot(qin, wqT_ref[...],
                preferred_element_type=jnp.float32) + bq_ref[...]
    Q = (Q * scale).astype(cdt)        # fold softmax scale into Q (TQ*C elems)

    K = k_cache[...]                                                # (S, C)
    V = v_cache[...]

    ctx = []
    for h in range(n_heads):                  # static head loop, static slices
        lo = h * hd
        hi = lo + hd
        Qh = Q[:, lo:hi]                                            # (TQ, hd)
        Kh = K[:, lo:hi]                                            # (S,  hd)
        Vh = V[:, lo:hi]                                            # (S,  hd)

        # NT matmul: contract the last dims (no explicit Kh.T / XLU transpose).
        s = lax.dot_general(Qh, Kh, (((1,), (1,)), ((), ())),
                            preferred_element_type=jnp.float32)    # (TQ, S)

        # TODO(synk): optional `mask` argument (masked_fill with -inf) is not
        # wired in; the reference forward is exercised with mask=None.
        # attn_dropout has p=0.0 -> identity in eval; no-op here.

        # Numerically-stable softmax, all f32; divide on the EUP slot.
        m = jnp.max(s, axis=-1, keepdims=True)
        e = jnp.exp(s - m)
        p = e * pl.reciprocal(jnp.sum(e, axis=-1, keepdims=True), approx=True)

        ctx.append(jnp.dot(p.astype(cdt), Vh,
                           preferred_element_type=jnp.float32))     # (TQ, hd)

    # Register-level head merge -> single fused K=C output projection.
    merged = jnp.concatenate(ctx, axis=-1).astype(cdt)              # (TQ, C)
    out = jnp.dot(merged, woT_ref[...],
                  preferred_element_type=jnp.float32) + bo_ref[...]
    out_ref[0] = out.astype(out_ref.dtype)                          # lane-dense


# --------------------------------------------------------------------------- #
# Host-side helpers
# --------------------------------------------------------------------------- #
def _supports_pipeline_mode() -> bool:
    if not hasattr(pl, "Buffered"):
        return False
    try:
        return "pipeline_mode" in inspect.signature(pl.BlockSpec).parameters
    except (TypeError, ValueError):
        return False


_HAS_PIPELINE_MODE = _supports_pipeline_mode()


def _vmem_capacity_bytes() -> int:
    """Per-generation VMEM capacity (v5e/v6e: 128 MiB, v7x: 64 MiB)."""
    try:
        return int(pltpu.get_tpu_info().vmem_capacity_bytes)
    except Exception:
        return 64 * 1024 * 1024  # conservative fallback (v7x per-TC)


def _choose_q_tile(T: int, vmem_bytes: int) -> int:
    """Largest MXU/VMEM-friendly query tile; bigger cap on 128-MiB parts."""
    cap = 512 if vmem_bytes >= 96 * 1024 * 1024 else 128
    if T <= cap:
        return T
    for tq in (512, 256, 128, 64, 32, 16, 8):
        if tq <= cap and T % tq == 0:
            return tq
    return T  # full-dim block (legal; only for awkward T)


def prepare_params(params, compute_dtype=jnp.bfloat16):
    """Convert PyTorch-convention (out,in) Linear params to the kernel layout.

    Call ONCE outside the hot path: weights are pre-transposed to (in, out)
    and cast to the MXU compute dtype (bf16 by default -- the MXUs are
    bf16-native; pass jnp.float32 for bit-faithful f32 matmuls).  Biases stay
    f32 (added to the f32 accumulators).
    """
    t = lambda w: jnp.asarray(w).T.astype(compute_dtype)
    b = lambda x: jnp.asarray(x).reshape(1, -1).astype(jnp.float32)
    return {
        "wqT": t(params["wq"]), "bq": b(params["bq"]),
        "wkT": t(params["wk"]), "bk": b(params["bk"]),
        "wvT": t(params["wv"]), "bv": b(params["bv"]),
        "woT": t(params["wo"]), "bo": b(params["bo"]),
    }


def multihead_attention(q, k, v, prepared, *, n_heads, q_tile=None):
    """q, k, v: (B, T, C).  `prepared`: output of prepare_params(...)."""
    B, T, C = q.shape
    assert C % n_heads == 0, "dim should be div by n_heads"
    assert k.shape == v.shape and k.shape[0] == B and k.shape[2] == C
    S = k.shape[1]

    vmem_cap = _vmem_capacity_bytes()
    TQ = q_tile if q_tile is not None else _choose_q_tile(T, vmem_cap)
    assert T % TQ == 0
    nqt = T // TQ
    cdt = prepared["wqT"].dtype

    kernel = functools.partial(_mha_kernel, n_heads=n_heads)

    # Advisory cost estimate (K/V projected & DMA'd once per batch; output
    # write included) so XLA doesn't schedule this as a zero-cost op.
    itemsize = jnp.dtype(q.dtype).itemsize
    w_itemsize = jnp.dtype(cdt).itemsize
    flops = int(4 * B * T * C * C + 4 * B * S * C * C + 4 * B * T * S * C)
    transcendentals = int(B * n_heads * T * S)
    bytes_accessed = int((2 * B * T * C + 2 * B * S * C) * itemsize
                         + 4 * C * C * w_itemsize + 4 * C * 4)

    def spec(shape, index_map, single_buffer):
        # Constant / once-per-batch blocks don't need double buffering.
        if single_buffer and _HAS_PIPELINE_MODE:
            return pl.BlockSpec(shape, index_map, pipeline_mode=pl.Buffered(1))
        return pl.BlockSpec(shape, index_map)

    def run(single_buffer_consts: bool):
        sb = single_buffer_consts
        q_spec = pl.BlockSpec((1, TQ, C), lambda b, t: (b, t, 0))
        o_spec = pl.BlockSpec((1, TQ, C), lambda b, t: (b, t, 0))
        kv_spec = spec((1, S, C), lambda b, t: (b, 0, 0), sb)
        w_spec = spec((C, C), lambda b, t: (0, 0), sb)
        b_spec = spec((1, C), lambda b, t: (0, 0), sb)

        return pl.pallas_call(
            kernel,
            out_shape=jax.ShapeDtypeStruct((B, T, C), q.dtype),
            grid_spec=pltpu.PrefetchScalarGridSpec(
                num_scalar_prefetch=0,
                grid=(B, nqt),  # query-tile axis innermost: K/V cache reused
                in_specs=[q_spec, kv_spec, kv_spec,
                          w_spec, b_spec, w_spec, b_spec, w_spec, b_spec,
                          w_spec, b_spec],
                out_specs=o_spec,
                scratch_shapes=[pltpu.VMEM((S, C), cdt),   # projected K cache
                                pltpu.VMEM((S, C), cdt)],  # projected V cache
            ),
            compiler_params=pltpu.CompilerParams(
                # batch: parallel (megacore); query tiles: sequential so the
                # per-batch K/V scratch written at t==0 is reused for t>0.
                dimension_semantics=("parallel", "arbitrary"),
                vmem_limit_bytes=int(vmem_cap * 3 // 4),
            ),
            cost_estimate=pl.CostEstimate(flops=flops,
                                          transcendentals=transcendentals,
                                          bytes_accessed=bytes_accessed),
        )(q, k, v,
          prepared["wqT"], prepared["bq"], prepared["wkT"], prepared["bk"],
          prepared["wvT"], prepared["bv"], prepared["woT"], prepared["bo"])

    if _HAS_PIPELINE_MODE:
        try:
            return run(True)
        except Exception:
            # Fallback: this Pallas build rejects pipeline_mode / Buffered(1).
            pass
    return run(False)


# --------------------------------------------------------------------------- #
# Pure-JAX reference (mirrors the PyTorch forward, mask=None, dropout p=0)
# --------------------------------------------------------------------------- #
def _reference(q, k, v, params, n_heads):
    B, T, C = q.shape
    hd = C // n_heads
    hp = lax.Precision.HIGHEST
    lin = lambda x, w, b: jnp.einsum("btc,oc->bto", x, w, precision=hp) + b
    Q = lin(q, params["wq"], params["bq"]).reshape(B, T, n_heads, hd).transpose(0, 2, 1, 3)
    K = lin(k, params["wk"], params["bk"]).reshape(B, T, n_heads, hd).transpose(0, 2, 1, 3)
    V = lin(v, params["wv"], params["bv"]).reshape(B, T, n_heads, hd).transpose(0, 2, 1, 3)
    s = jnp.einsum("bhqd,bhkd->bhqk", Q, K, precision=hp) * hd ** (-0.5)
    p = jax.nn.softmax(s, axis=-1)
    a = jnp.einsum("bhqk,bhkd->bhqd", p, V, precision=hp).transpose(0, 2, 1, 3).reshape(B, T, C)
    return jnp.einsum("btc,oc->bto", a, params["wo"], precision=hp) + params["bo"]


if __name__ == "__main__":
    B, T, C, n_heads = 2, 16, 128, 4  # C=128 -> full-lane-width blocks

    key = jax.random.PRNGKey(0)
    keys = jax.random.split(key, 11)
    bound = 1.0 / (C ** 0.5)  # PyTorch nn.Linear default init range
    init_w = lambda kk: jax.random.uniform(kk, (C, C), jnp.float32, -bound, bound)
    init_b = lambda kk: jax.random.uniform(kk, (C,), jnp.float32, -bound, bound)

    params = {
        "wq": init_w(keys[0]), "bq": init_b(keys[1]),
        "wk": init_w(keys[2]), "bk": init_b(keys[3]),
        "wv": init_w(keys[4]), "bv": init_b(keys[5]),
        "wo": init_w(keys[6]), "bo": init_b(keys[7]),
    }

    q = jax.random.normal(keys[8], (B, T, C), jnp.float32)
    k = jax.random.normal(keys[9], (B, T, C), jnp.float32)
    v = jax.random.normal(keys[10], (B, T, C), jnp.float32)

    ref = _reference(q, k, v, params, n_heads)

    # 1) f32-MXU path with q_tile=8 -> grid (B, 2): exercises the per-batch
    #    K/V VMEM cache being written at tile 0 and reused at tile 1.
    prep32 = prepare_params(params, jnp.float32)
    out32 = jax.block_until_ready(
        multihead_attention(q, k, v, prep32, n_heads=n_heads, q_tile=8))
    assert out32.shape == (B, T, C)
    assert jnp.allclose(out32, ref, atol=5e-3, rtol=5e-3), "f32 mismatch vs reference"

    # 2) Recommended path: bf16 MXU operands (weights prepared as bf16,
    #    activations cast in-kernel), f32 accumulation + f32 softmax.
    prep16 = prepare_params(params)  # default compute_dtype=bf16
    out16 = jax.block_until_ready(
        multihead_attention(q, k, v, prep16, n_heads=n_heads))
    assert jnp.allclose(out16, ref, atol=1e-1, rtol=1e-1), "bf16 mismatch vs reference"

    print("KERNEL_OK")
</pallas_src>

<mosaic_0001>
module attributes {stable_mosaic.version = 11 : i64} {
  func.func @_mha_kernel(%arg0: i32, %arg1: i32, %arg2: memref<1x8x128xf32, #tpu.memory_space<vmem>>, %arg3: memref<1x16x128xf32, #tpu.memory_space<vmem>>, %arg4: memref<1x16x128xf32, #tpu.memory_space<vmem>>, %arg5: memref<128x128xf32, #tpu.memory_space<vmem>>, %arg6: memref<1x128xf32, #tpu.memory_space<vmem>>, %arg7: memref<128x128xf32, #tpu.memory_space<vmem>>, %arg8: memref<1x128xf32, #tpu.memory_space<vmem>>, %arg9: memref<128x128xf32, #tpu.memory_space<vmem>>, %arg10: memref<1x128xf32, #tpu.memory_space<vmem>>, %arg11: memref<128x128xf32, #tpu.memory_space<vmem>>, %arg12: memref<1x128xf32, #tpu.memory_space<vmem>>, %arg13: memref<1x8x128xf32, #tpu.memory_space<vmem>>, %arg14: memref<16x128xf32, #tpu.memory_space<vmem>>, %arg15: memref<16x128xf32, #tpu.memory_space<vmem>>) attributes {dimension_semantics = [#tpu.dimension_semantics<parallel>, #tpu.dimension_semantics<arbitrary>], iteration_bounds = array<i64: 2, 2>, scalar_prefetch = 0 : i64, scratch_operands = 2 : i64, tpu.core_type = #tpu.core_type<tc>, window_params = [{transform_indices = @transform_0, window_bounds = array<i64: 1, 8, 128>}, {pipeline_mode = #tpu.pipeline_mode<synchronous>, transform_indices = @transform_1, window_bounds = array<i64: 1, 16, 128>}, {pipeline_mode = #tpu.pipeline_mode<synchronous>, transform_indices = @transform_2, window_bounds = array<i64: 1, 16, 128>}, {pipeline_mode = #tpu.pipeline_mode<synchronous>, transform_indices = @transform_3, window_bounds = array<i64: 128, 128>}, {pipeline_mode = #tpu.pipeline_mode<synchronous>, transform_indices = @transform_4, window_bounds = array<i64: 1, 128>}, {pipeline_mode = #tpu.pipeline_mode<synchronous>, transform_indices = @transform_5, window_bounds = array<i64: 128, 128>}, {pipeline_mode = #tpu.pipeline_mode<synchronous>, transform_indices = @transform_6, window_bounds = array<i64: 1, 128>}, {pipeline_mode = #tpu.pipeline_mode<synchronous>, transform_indices = @transform_7, window_bounds = array<i64: 128, 128>}, {pipeline_mode = #tpu.pipeline_mode<synchronous>, transform_indices = @transform_8, window_bounds = array<i64: 1, 128>}, {pipeline_mode = #tpu.pipeline_mode<synchronous>, transform_indices = @transform_9, window_bounds = array<i64: 128, 128>}, {pipeline_mode = #tpu.pipeline_mode<synchronous>, transform_indices = @transform_10, window_bounds = array<i64: 1, 128>}, {transform_indices = @transform_11, window_bounds = array<i64: 1, 8, 128>}]} {
    %c0_i32 = arith.constant 0 : i32
    %0 = arith.cmpi eq, %arg1, %c0_i32 : i32
    %1 = arith.extui %0 : i1 to i32
    %c0_i32_0 = arith.constant 0 : i32
    %2 = arith.cmpi ne, %1, %c0_i32_0 : i32
    scf.if %2 {
      %c0_36 = arith.constant 0 : index
      %c0_37 = arith.constant 0 : index
      %c0_38 = arith.constant 0 : index
      %83 = vector.load %arg3[%c0_36, %c0_37, %c0_38] : memref<1x16x128xf32, #tpu.memory_space<vmem>>, vector<1x16x128xf32>
      %84 = vector.shape_cast %83 : vector<1x16x128xf32> to vector<16x128xf32>
      %c0_39 = arith.constant 0 : index
      %c0_40 = arith.constant 0 : index
      %c0_41 = arith.constant 0 : index
      %85 = vector.load %arg4[%c0_39, %c0_40, %c0_41] : memref<1x16x128xf32, #tpu.memory_space<vmem>>, vector<1x16x128xf32>
      %86 = vector.shape_cast %85 : vector<1x16x128xf32> to vector<16x128xf32>
      %c0_42 = arith.constant 0 : index
      %c0_43 = arith.constant 0 : index
      %87 = vector.load %arg7[%c0_42, %c0_43] : memref<128x128xf32, #tpu.memory_space<vmem>>, vector<128x128xf32>
      %cst_44 = arith.constant dense<0.000000e+00> : vector<16x128xf32>
      %88 = tpu.matmul %84, %87, %cst_44 {dimension_numbers = #tpu.dot_dimension_numbers<[1], [0], [0], [1], [0, 0, 1, 1], [], []>} : vector<16x128xf32>, vector<128x128xf32>, vector<16x128xf32> -> vector<16x128xf32>
      %c0_45 = arith.constant 0 : index
      %c0_46 = arith.constant 0 : index
      %89 = vector.load %arg8[%c0_45, %c0_46] : memref<1x128xf32, #tpu.memory_space<vmem>>, vector<1x128xf32>
      %90 = vector.broadcast %89 : vector<1x128xf32> to vector<16x128xf32>
      %91 = arith.addf %88, %90 : vector<16x128xf32>
      %c0_47 = arith.constant 0 : index
      %c0_48 = arith.constant 0 : index
      %92 = vector.load %arg9[%c0_47, %c0_48] : memref<128x128xf32, #tpu.memory_space<vmem>>, vector<128x128xf32>
      %cst_49 = arith.constant dense<0.000000e+00> : vector<16x128xf32>
      %93 = tpu.matmul %86, %92, %cst_49 {dimension_numbers = #tpu.dot_dimension_numbers<[1], [0], [0], [1], [0, 0, 1, 1], [], []>} : vector<16x128xf32>, vector<128x128xf32>, vector<16x128xf32> -> vector<16x128xf32>
      %c0_50 = arith.constant 0 : index
      %c0_51 = arith.constant 0 : index
      %94 = vector.load %arg10[%c0_50, %c0_51] : memref<1x128xf32, #tpu.memory_space<vmem>>, vector<1x128xf32>
      %95 = vector.broadcast %94 : vector<1x128xf32> to vector<16x128xf32>
      %96 = arith.addf %93, %95 : vector<16x128xf32>
      %c0_52 = arith.constant 0 : index
      %c0_53 = arith.constant 0 : index
      %97 = vector.load %arg14[%c0_52, %c0_53] : memref<16x128xf32, #tpu.memory_space<vmem>>, vector<16x128xf32>
      tpu.vector_store %arg14[%c0_52, %c0_53], %91 {strides = array<i32>} : memref<16x128xf32, #tpu.memory_space<vmem>>, vector<16x128xf32>,
      %c0_54 = arith.constant 0 : index
      %c0_55 = arith.constant 0 : index
      %98 = vector.load %arg15[%c0_54, %c0_55] : memref<16x128xf32, #tpu.memory_space<vmem>>, vector<16x128xf32>
      tpu.vector_store %arg15[%c0_54, %c0_55], %96 {strides = array<i32>} : memref<16x128xf32, #tpu.memory_space<vmem>>, vector<16x128xf32>,
    } else {
    }
    %c0 = arith.constant 0 : index
    %c0_1 = arith.constant 0 : index
    %c0_2 = arith.constant 0 : index
    %3 = vector.load %arg2[%c0, %c0_1, %c0_2] : memref<1x8x128xf32, #tpu.memory_space<vmem>>, vector<1x8x128xf32>
    %4 = vector.shape_cast %3 : vector<1x8x128xf32> to vector<8x128xf32>
    %c0_3 = arith.constant 0 : index
    %c0_4 = arith.constant 0 : index
    %5 = vector.load %arg5[%c0_3, %c0_4] : memref<128x128xf32, #tpu.memory_space<vmem>>, vector<128x128xf32>
    %cst = arith.constant dense<0.000000e+00> : vector<8x128xf32>
    %6 = tpu.matmul %4, %5, %cst {dimension_numbers = #tpu.dot_dimension_numbers<[1], [0], [0], [1], [0, 0, 1, 1], [], []>} : vector<8x128xf32>, vector<128x128xf32>, vector<8x128xf32> -> vector<8x128xf32>
    %c0_5 = arith.constant 0 : index
    %c0_6 = arith.constant 0 : index
    %7 = vector.load %arg6[%c0_5, %c0_6] : memref<1x128xf32, #tpu.memory_space<vmem>>, vector<1x128xf32>
    %8 = vector.broadcast %7 : vector<1x128xf32> to vector<8x128xf32>
    %9 = arith.addf %6, %8 : vector<8x128xf32>
    %cst_7 = arith.constant 0.176776692 : f32
    %10 = vector.broadcast %cst_7 : f32 to vector<8x128xf32>
    %11 = arith.mulf %9, %10 : vector<8x128xf32>
    %c0_8 = arith.constant 0 : index
    %c0_9 = arith.constant 0 : index
    %12 = vector.load %arg14[%c0_8, %c0_9] : memref<16x128xf32, #tpu.memory_space<vmem>>, vector<16x128xf32>
    %c0_10 = arith.constant 0 : index
    %c0_11 = arith.constant 0 : index
    %13 = vector.load %arg15[%c0_10, %c0_11] : memref<16x128xf32, #tpu.memory_space<vmem>>, vector<16x128xf32>
    %14 = vector.extract_strided_slice %11 {offsets = [0, 0], sizes = [8, 32], strides = [1, 1]} : vector<8x128xf32> to vector<8x32xf32>
    %15 = vector.extract_strided_slice %12 {offsets = [0, 0], sizes = [16, 32], strides = [1, 1]} : vector<16x128xf32> to vector<16x32xf32>
    %16 = vector.extract_strided_slice %13 {offsets = [0, 0], sizes = [16, 32], strides = [1, 1]} : vector<16x128xf32> to vector<16x32xf32>
    %cst_12 = arith.constant dense<0.000000e+00> : vector<8x16xf32>
    %17 = tpu.matmul %14, %15, %cst_12 {dimension_numbers = #tpu.dot_dimension_numbers<[1], [1], [0], [0], [0, 0, 1, 0], [], []>} : vector<8x32xf32>, vector<16x32xf32>, vector<8x16xf32> -> vector<8x16xf32>
    %cst_13 = arith.constant dense<0xFF800000> : vector<8xf32>
    %18 = vector.multi_reduction <maximumf>, %17, %cst_13 [1] : vector<8x16xf32> to vector<8xf32>
    %19 = vector.shape_cast %18 : vector<8xf32> to vector<8x1xf32>
    %20 = vector.broadcast %19 : vector<8x1xf32> to vector<8x16xf32>
    %21 = arith.subf %17, %20 : vector<8x16xf32>
    %22 = math.exp %21 : vector<8x16xf32>
    %cst_14 = arith.constant dense<0.000000e+00> : vector<8xf32>
    %23 = vector.multi_reduction <add>, %22, %cst_14 [1] : vector<8x16xf32> to vector<8xf32>
    %24 = vector.shape_cast %23 : vector<8xf32> to vector<8x1xf32>
    %25 = tpu.reciprocal %24 {approx = true} : vector<8x1xf32> -> vector<8x1xf32>
    %26 = vector.broadcast %25 : vector<8x1xf32> to vector<8x16xf32>
    %27 = arith.mulf %22, %26 : vector<8x16xf32>
    %cst_15 = arith.constant dense<0.000000e+00> : vector<8x32xf32>
    %28 = tpu.matmul %27, %16, %cst_15 {dimension_numbers = #tpu.dot_dimension_numbers<[1], [0], [0], [1], [0, 0, 1, 1], [], []>} : vector<8x16xf32>, vector<16x32xf32>, vector<8x32xf32> -> vector<8x32xf32>
    %29 = vector.extract_strided_slice %11 {offsets = [0, 32], sizes = [8, 32], strides = [1, 1]} : vector<8x128xf32> to vector<8x32xf32>
    %30 = vector.extract_strided_slice %12 {offsets = [0, 32], sizes = [16, 32], strides = [1, 1]} : vector<16x128xf32> to vector<16x32xf32>
    %31 = vector.extract_strided_slice %13 {offsets = [0, 32], sizes = [16, 32], strides = [1, 1]} : vector<16x128xf32> to vector<16x32xf32>
    %cst_16 = arith.constant dense<0.000000e+00> : vector<8x16xf32>
    %32 = tpu.matmul %29, %30, %cst_16 {dimension_numbers = #tpu.dot_dimension_numbers<[1], [1], [0], [0], [0, 0, 1, 0], [], []>} : vector<8x32xf32>, vector<16x32xf32>, vector<8x16xf32> -> vector<8x16xf32>
    %cst_17 = arith.constant dense<0xFF800000> : vector<8xf32>
    %33 = vector.multi_reduction <maximumf>, %32, %cst_17 [1] : vector<8x16xf32> to vector<8xf32>
    %34 = vector.shape_cast %33 : vector<8xf32> to vector<8x1xf32>
    %35 = vector.broadcast %34 : vector<8x1xf32> to vector<8x16xf32>
    %36 = arith.subf %32, %35 : vector<8x16xf32>
    %37 = math.exp %36 : vector<8x16xf32>
    %cst_18 = arith.constant dense<0.000000e+00> : vector<8xf32>
    %38 = vector.multi_reduction <add>, %37, %cst_18 [1] : vector<8x16xf32> to vector<8xf32>
    %39 = vector.shape_cast %38 : vector<8xf32> to vector<8x1xf32>
    %40 = tpu.reciprocal %39 {approx = true} : vector<8x1xf32> -> vector<8x1xf32>
    %41 = vector.broadcast %40 : vector<8x1xf32> to vector<8x16xf32>
    %42 = arith.mulf %37, %41 : vector<8x16xf32>
    %cst_19 = arith.constant dense<0.000000e+00> : vector<8x32xf32>
    %43 = tpu.matmul %42, %31, %cst_19 {dimension_numbers = #tpu.dot_dimension_numbers<[1], [0], [0], [1], [0, 0, 1, 1], [], []>} : vector<8x16xf32>, vector<16x32xf32>, vector<8x32xf32> -> vector<8x32xf32>
    %44 = vector.extract_strided_slice %11 {offsets = [0, 64], sizes = [8, 32], strides = [1, 1]} : vector<8x128xf32> to vector<8x32xf32>
    %45 = vector.extract_strided_slice %12 {offsets = [0, 64], sizes = [16, 32], strides = [1, 1]} : vector<16x128xf32> to vector<16x32xf32>
    %46 = vector.extract_strided_slice %13 {offsets = [0, 64], sizes = [16, 32], strides = [1, 1]} : vector<16x128xf32> to vector<16x32xf32>
    %cst_20 = arith.constant dense<0.000000e+00> : vector<8x16xf32>
    %47 = tpu.matmul %44, %45, %cst_20 {dimension_numbers = #tpu.dot_dimension_numbers<[1], [1], [0], [0], [0, 0, 1, 0], [], []>} : vector<8x32xf32>, vector<16x32xf32>, vector<8x16xf32> -> vector<8x16xf32>
    %cst_21 = arith.constant dense<0xFF800000> : vector<8xf32>
    %48 = vector.multi_reduction <maximumf>, %47, %cst_21 [1] : vector<8x16xf32> to vector<8xf32>
    %49 = vector.shape_cast %48 : vector<8xf32> to vector<8x1xf32>
    %50 = vector.broadcast %49 : vector<8x1xf32> to vector<8x16xf32>
    %51 = arith.subf %47, %50 : vector<8x16xf32>
    %52 = math.exp %51 : vector<8x16xf32>
    %cst_22 = arith.constant dense<0.000000e+00> : vector<8xf32>
    %53 = vector.multi_reduction <add>, %52, %cst_22 [1] : vector<8x16xf32> to vector<8xf32>
    %54 = vector.shape_cast %53 : vector<8xf32> to vector<8x1xf32>
    %55 = tpu.reciprocal %54 {approx = true} : vector<8x1xf32> -> vector<8x1xf32>
    %56 = vector.broadcast %55 : vector<8x1xf32> to vector<8x16xf32>
    %57 = arith.mulf %52, %56 : vector<8x16xf32>
    %cst_23 = arith.constant dense<0.000000e+00> : vector<8x32xf32>
    %58 = tpu.matmul %57, %46, %cst_23 {dimension_numbers = #tpu.dot_dimension_numbers<[1], [0], [0], [1], [0, 0, 1, 1], [], []>} : vector<8x16xf32>, vector<16x32xf32>, vector<8x32xf32> -> vector<8x32xf32>
    %59 = vector.extract_strided_slice %11 {offsets = [0, 96], sizes = [8, 32], strides = [1, 1]} : vector<8x128xf32> to vector<8x32xf32>
    %60 = vector.extract_strided_slice %12 {offsets = [0, 96], sizes = [16, 32], strides = [1, 1]} : vector<16x128xf32> to vector<16x32xf32>
    %61 = vector.extract_strided_slice %13 {offsets = [0, 96], sizes = [16, 32], strides = [1, 1]} : vector<16x128xf32> to vector<16x32xf32>
    %cst_24 = arith.constant dense<0.000000e+00> : vector<8x16xf32>
    %62 = tpu.matmul %59, %60, %cst_24 {dimension_numbers = #tpu.dot_dimension_numbers<[1], [1], [0], [0], [0, 0, 1, 0], [], []>} : vector<8x32xf32>, vector<16x32xf32>, vector<8x16xf32> -> vector<8x16xf32>
    %cst_25 = arith.constant dense<0xFF800000> : vector<8xf32>
    %63 = vector.multi_reduction <maximumf>, %62, %cst_25 [1] : vector<8x16xf32> to vector<8xf32>
    %64 = vector.shape_cast %63 : vector<8xf32> to vector<8x1xf32>
    %65 = vector.broadcast %64 : vector<8x1xf32> to vector<8x16xf32>
    %66 = arith.subf %62, %65 : vector<8x16xf32>
    %67 = math.exp %66 : vector<8x16xf32>
    %cst_26 = arith.constant dense<0.000000e+00> : vector<8xf32>
    %68 = vector.multi_reduction <add>, %67, %cst_26 [1] : vector<8x16xf32> to vector<8xf32>
    %69 = vector.shape_cast %68 : vector<8xf32> to vector<8x1xf32>
    %70 = tpu.reciprocal %69 {approx = true} : vector<8x1xf32> -> vector<8x1xf32>
    %71 = vector.broadcast %70 : vector<8x1xf32> to vector<8x16xf32>
    %72 = arith.mulf %67, %71 : vector<8x16xf32>
    %cst_27 = arith.constant dense<0.000000e+00> : vector<8x32xf32>
    %73 = tpu.matmul %72, %61, %cst_27 {dimension_numbers = #tpu.dot_dimension_numbers<[1], [0], [0], [1], [0, 0, 1, 1], [], []>} : vector<8x16xf32>, vector<16x32xf32>, vector<8x32xf32> -> vector<8x32xf32>
    %74 = tpu.concatenate %28, %43, %58, %73 in 1 : vector<8x32xf32>, vector<8x32xf32>, vector<8x32xf32>, vector<8x32xf32> -> vector<8x128xf32>
    %c0_28 = arith.constant 0 : index
    %c0_29 = arith.constant 0 : index
    %75 = vector.load %arg11[%c0_28, %c0_29] : memref<128x128xf32, #tpu.memory_space<vmem>>, vector<128x128xf32>
    %cst_30 = arith.constant dense<0.000000e+00> : vector<8x128xf32>
    %76 = tpu.matmul %74, %75, %cst_30 {dimension_numbers = #tpu.dot_dimension_numbers<[1], [0], [0], [1], [0, 0, 1, 1], [], []>} : vector<8x128xf32>, vector<128x128xf32>, vector<8x128xf32> -> vector<8x128xf32>
    %c0_31 = arith.constant 0 : index
    %c0_32 = arith.constant 0 : index
    %77 = vector.load %arg12[%c0_31, %c0_32] : memref<1x128xf32, #tpu.memory_space<vmem>>, vector<1x128xf32>
    %78 = vector.broadcast %77 : vector<1x128xf32> to vector<8x128xf32>
    %79 = arith.addf %76, %78 : vector<8x128xf32>
    %c0_33 = arith.constant 0 : index
    %c0_34 = arith.constant 0 : index
    %c0_35 = arith.constant 0 : index
    %80 = vector.load %arg13[%c0_33, %c0_34, %c0_35] : memref<1x8x128xf32, #tpu.memory_space<vmem>>, vector<1x8x128xf32>
    %81 = vector.shape_cast %80 : vector<1x8x128xf32> to vector<8x128xf32>
    %82 = vector.shape_cast %79 : vector<8x128xf32> to vector<1x8x128xf32>
    tpu.vector_store %arg13[%c0_33, %c0_34, %c0_35], %82 {strides = array<i32>} : memref<1x8x128xf32, #tpu.memory_space<vmem>>, vector<1x8x128xf32>,
    return
  }
  func.func @transform_0(%arg0: i32, %arg1: i32) -> (i32, i32, i32) {
    %c0_i32 = arith.constant 0 : i32
    %c0_i32_0 = arith.constant 0 : i32
    return %arg0, %arg1, %c0_i32 : i32, i32, i32
  }
  func.func @transform_1(%arg0: i32, %arg1: i32) -> (i32, i32, i32) {
    %c0_i32 = arith.constant 0 : i32
    %c0_i32_0 = arith.constant 0 : i32
    %c0_i32_1 = arith.constant 0 : i32
    return %arg0, %c0_i32, %c0_i32_0 : i32, i32, i32
  }
  func.func @transform_2(%arg0: i32, %arg1: i32) -> (i32, i32, i32) {
    %c0_i32 = arith.constant 0 : i32
    %c0_i32_0 = arith.constant 0 : i32
    %c0_i32_1 = arith.constant 0 : i32
    return %arg0, %c0_i32, %c0_i32_0 : i32, i32, i32
  }
  func.func @transform_3(%arg0: i32, %arg1: i32) -> (i32, i32) {
    %c0_i32 = arith.constant 0 : i32
    %c0_i32_0 = arith.constant 0 : i32
    %c0_i32_1 = arith.constant 0 : i32
    return %c0_i32, %c0_i32_0 : i32, i32
  }
  func.func @transform_4(%arg0: i32, %arg1: i32) -> (i32, i32) {
    %c0_i32 = arith.constant 0 : i32
    %c0_i32_0 = arith.constant 0 : i32
    %c0_i32_1 = arith.constant 0 : i32
    return %c0_i32, %c0_i32_0 : i32, i32
  }
  func.func @transform_5(%arg0: i32, %arg1: i32) -> (i32, i32) {
    %c0_i32 = arith.constant 0 : i32
    %c0_i32_0 = arith.constant 0 : i32
    %c0_i32_1 = arith.constant 0 : i32
    return %c0_i32, %c0_i32_0 : i32, i32
  }
  func.func @transform_6(%arg0: i32, %arg1: i32) -> (i32, i32) {
    %c0_i32 = arith.constant 0 : i32
    %c0_i32_0 = arith.constant 0 : i32
    %c0_i32_1 = arith.constant 0 : i32
    return %c0_i32, %c0_i32_0 : i32, i32
  }
  func.func @transform_7(%arg0: i32, %arg1: i32) -> (i32, i32) {
    %c0_i32 = arith.constant 0 : i32
    %c0_i32_0 = arith.constant 0 : i32
    %c0_i32_1 = arith.constant 0 : i32
    return %c0_i32, %c0_i32_0 : i32, i32
  }
  func.func @transform_8(%arg0: i32, %arg1: i32) -> (i32, i32) {
    %c0_i32 = arith.constant 0 : i32
    %c0_i32_0 = arith.constant 0 : i32
    %c0_i32_1 = arith.constant 0 : i32
    return %c0_i32, %c0_i32_0 : i32, i32
  }
  func.func @transform_9(%arg0: i32, %arg1: i32) -> (i32, i32) {
    %c0_i32 = arith.constant 0 : i32
    %c0_i32_0 = arith.constant 0 : i32
    %c0_i32_1 = arith.constant 0 : i32
    return %c0_i32, %c0_i32_0 : i32, i32
  }
  func.func @transform_10(%arg0: i32, %arg1: i32) -> (i32, i32) {
    %c0_i32 = arith.constant 0 : i32
    %c0_i32_0 = arith.constant 0 : i32
    %c0_i32_1 = arith.constant 0 : i32
    return %c0_i32, %c0_i32_0 : i32, i32
  }
  func.func @transform_11(%arg0: i32, %arg1: i32) -> (i32, i32, i32) {
    %c0_i32 = arith.constant 0 : i32
    %c0_i32_0 = arith.constant 0 : i32
    return %arg0, %arg1, %c0_i32 : i32, i32, i32
  }
}

module attributes {stable_mosaic.version = 11 : i64} {
  func.func @_mha_kernel(%arg0: i32, %arg1: i32, %arg2: memref<1x8x128xf32, #tpu.memory_space<vmem>>, %arg3: memref<1x16x128xf32, #tpu.memory_space<vmem>>, %arg4: memref<1x16x128xf32, #tpu.memory_space<vmem>>, %arg5: memref<128x128xf32, #tpu.memory_space<vmem>>, %arg6: memref<1x128xf32, #tpu.memory_space<vmem>>, %arg7: memref<128x128xf32, #tpu.memory_space<vmem>>, %arg8: memref<1x128xf32, #tpu.memory_space<vmem>>, %arg9: memref<128x128xf32, #tpu.memory_space<vmem>>, %arg10: memref<1x128xf32, #tpu.memory_space<vmem>>, %arg11: memref<128x128xf32, #tpu.memory_space<vmem>>, %arg12: memref<1x128xf32, #tpu.memory_space<vmem>>, %arg13: memref<1x8x128xf32, #tpu.memory_space<vmem>>, %arg14: memref<16x128xf32, #tpu.memory_space<vmem>>, %arg15: memref<16x128xf32, #tpu.memory_space<vmem>>) attributes {dimension_semantics = [#tpu.dimension_semantics<parallel>, #tpu.dimension_semantics<arbitrary>], iteration_bounds = array<i64: 2, 2>, scalar_prefetch = 0 : i64, scratch_operands = 2 : i64, tpu.core_type = #tpu.core_type<tc>, window_params = [{transform_indices = @transform_0, window_bounds = array<i64: 1, 8, 128>}, {transform_indices = @transform_1, window_bounds = array<i64: 1, 16, 128>}, {transform_indices = @transform_2, window_bounds = array<i64: 1, 16, 128>}, {pipeline_mode = #tpu.pipeline_mode<synchronous>, transform_indices = @transform_3, window_bounds = array<i64: 128, 128>}, {pipeline_mode = #tpu.pipeline_mode<synchronous>, transform_indices = @transform_4, window_bounds = array<i64: 1, 128>}, {pipeline_mode = #tpu.pipeline_mode<synchronous>, transform_indices = @transform_5, window_bounds = array<i64: 128, 128>}, {pipeline_mode = #tpu.pipeline_mode<synchronous>, transform_indices = @transform_6, window_bounds = array<i64: 1, 128>}, {pipeline_mode = #tpu.pipeline_mode<synchronous>, transform_indices = @transform_7, window_bounds = array<i64: 128, 128>}, {pipeline_mode = #tpu.pipeline_mode<synchronous>, transform_indices = @transform_8, window_bounds = array<i64: 1, 128>}, {pipeline_mode = #tpu.pipeline_mode<synchronous>, transform_indices = @transform_9, window_bounds = array<i64: 128, 128>}, {pipeline_mode = #tpu.pipeline_mode<synchronous>, transform_indices = @transform_10, window_bounds = array<i64: 1, 128>}, {transform_indices = @transform_11, window_bounds = array<i64: 1, 8, 128>}]} {
    %c0_i32 = arith.constant 0 : i32
    %0 = arith.cmpi eq, %arg1, %c0_i32 : i32
    %1 = arith.extui %0 : i1 to i32
    %c0_i32_0 = arith.constant 0 : i32
    %2 = arith.cmpi ne, %1, %c0_i32_0 : i32
    scf.if %2 {
      %c0_36 = arith.constant 0 : index
      %c0_37 = arith.constant 0 : index
      %c0_38 = arith.constant 0 : index
      %83 = vector.load %arg3[%c0_36, %c0_37, %c0_38] : memref<1x16x128xf32, #tpu.memory_space<vmem>>, vector<1x16x128xf32>
      %84 = vector.shape_cast %83 : vector<1x16x128xf32> to vector<16x128xf32>
      %c0_39 = arith.constant 0 : index
      %c0_40 = arith.constant 0 : index
      %c0_41 = arith.constant 0 : index
      %85 = vector.load %arg4[%c0_39, %c0_40, %c0_41] : memref<1x16x128xf32, #tpu.memory_space<vmem>>, vector<1x16x128xf32>
      %86 = vector.shape_cast %85 : vector<1x16x128xf32> to vector<16x128xf32>
      %c0_42 = arith.constant 0 : index
      %c0_43 = arith.constant 0 : index
      %87 = vector.load %arg7[%c0_42, %c0_43] : memref<128x128xf32, #tpu.memory_space<vmem>>, vector<128x128xf32>
      %cst_44 = arith.constant dense<0.000000e+00> : vector<16x128xf32>
      %88 = tpu.matmul %84, %87, %cst_44 {dimension_numbers = #tpu.dot_dimension_numbers<[1], [0], [0], [1], [0, 0, 1, 1], [], []>} : vector<16x128xf32>, vector<128x128xf32>, vector<16x128xf32> -> vector<16x128xf32>
      %c0_45 = arith.constant 0 : index
      %c0_46 = arith.constant 0 : index
      %89 = vector.load %arg8[%c0_45, %c0_46] : memref<1x128xf32, #tpu.memory_space<vmem>>, vector<1x128xf32>
      %90 = vector.broadcast %89 : vector<1x128xf32> to vector<16x128xf32>
      %91 = arith.addf %88, %90 : vector<16x128xf32>
      %c0_47 = arith.constant 0 : index
      %c0_48 = arith.constant 0 : index
      %92 = vector.load %arg9[%c0_47, %c0_48] : memref<128x128xf32, #tpu.memory_space<vmem>>, vector<128x128xf32>
      %cst_49 = arith.constant dense<0.000000e+00> : vector<16x128xf32>
      %93 = tpu.matmul %86, %92, %cst_49 {dimension_numbers = #tpu.dot_dimension_numbers<[1], [0], [0], [1], [0, 0, 1, 1], [], []>} : vector<16x128xf32>, vector<128x128xf32>, vector<16x128xf32> -> vector<16x128xf32>
      %c0_50 = arith.constant 0 : index
      %c0_51 = arith.constant 0 : index
      %94 = vector.load %arg10[%c0_50, %c0_51] : memref<1x128xf32, #tpu.memory_space<vmem>>, vector<1x128xf32>
      %95 = vector.broadcast %94 : vector<1x128xf32> to vector<16x128xf32>
      %96 = arith.addf %93, %95 : vector<16x128xf32>
      %c0_52 = arith.constant 0 : index
      %c0_53 = arith.constant 0 : index
      %97 = vector.load %arg14[%c0_52, %c0_53] : memref<16x128xf32, #tpu.memory_space<vmem>>, vector<16x128xf32>
      tpu.vector_store %arg14[%c0_52, %c0_53], %91 {strides = array<i32>} : memref<16x128xf32, #tpu.memory_space<vmem>>, vector<16x128xf32>,
      %c0_54 = arith.constant 0 : index
      %c0_55 = arith.constant 0 : index
      %98 = vector.load %arg15[%c0_54, %c0_55] : memref<16x128xf32, #tpu.memory_space<vmem>>, vector<16x128xf32>
      tpu.vector_store %arg15[%c0_54, %c0_55], %96 {strides = array<i32>} : memref<16x128xf32, #tpu.memory_space<vmem>>, vector<16x128xf32>,
    } else {
    }
    %c0 = arith.constant 0 : index
    %c0_1 = arith.constant 0 : index
    %c0_2 = arith.constant 0 : index
    %3 = vector.load %arg2[%c0, %c0_1, %c0_2] : memref<1x8x128xf32, #tpu.memory_space<vmem>>, vector<1x8x128xf32>
    %4 = vector.shape_cast %3 : vector<1x8x128xf32> to vector<8x128xf32>
    %c0_3 = arith.constant 0 : index
    %c0_4 = arith.constant 0 : index
    %5 = vector.load %arg5[%c0_3, %c0_4] : memref<128x128xf32, #tpu.memory_space<vmem>>, vector<128x128xf32>
    %cst = arith.constant dense<0.000000e+00> : vector<8x128xf32>
    %6 = tpu.matmul %4, %5, %cst {dimension_numbers = #tpu.dot_dimension_numbers<[1], [0], [0], [1], [0, 0, 1, 1], [], []>} : vector<8x128xf32>, vector<128x128xf32>, vector<8x128xf32> -> vector<8x128xf32>
    %c0_5 = arith.constant 0 : index
    %c0_6 = arith.constant 0 : index
    %7 = vector.load %arg6[%c0_5, %c0_6] : memref<1x128xf32, #tpu.memory_space<vmem>>, vector<1x128xf32>
    %8 = vector.broadcast %7 : vector<1x128xf32> to vector<8x128xf32>
    %9 = arith.addf %6, %8 : vector<8x128xf32>
    %cst_7 = arith.constant 0.176776692 : f32
    %10 = vector.broadcast %cst_7 : f32 to vector<8x128xf32>
    %11 = arith.mulf %9, %10 : vector<8x128xf32>
    %c0_8 = arith.constant 0 : index
    %c0_9 = arith.constant 0 : index
    %12 = vector.load %arg14[%c0_8, %c0_9] : memref<16x128xf32, #tpu.memory_space<vmem>>, vector<16x128xf32>
    %c0_10 = arith.constant 0 : index
    %c0_11 = arith.constant 0 : index
    %13 = vector.load %arg15[%c0_10, %c0_11] : memref<16x128xf32, #tpu.memory_space<vmem>>, vector<16x128xf32>
    %14 = vector.extract_strided_slice %11 {offsets = [0, 0], sizes = [8, 32], strides = [1, 1]} : vector<8x128xf32> to vector<8x32xf32>
    %15 = vector.extract_strided_slice %12 {offsets = [0, 0], sizes = [16, 32], strides = [1, 1]} : vector<16x128xf32> to vector<16x32xf32>
    %16 = vector.extract_strided_slice %13 {offsets = [0, 0], sizes = [16, 32], strides = [1, 1]} : vector<16x128xf32> to vector<16x32xf32>
    %cst_12 = arith.constant dense<0.000000e+00> : vector<8x16xf32>
    %17 = tpu.matmul %14, %15, %cst_12 {dimension_numbers = #tpu.dot_dimension_numbers<[1], [1], [0], [0], [0, 0, 1, 0], [], []>} : vector<8x32xf32>, vector<16x32xf32>, vector<8x16xf32> -> vector<8x16xf32>
    %cst_13 = arith.constant dense<0xFF800000> : vector<8xf32>
    %18 = vector.multi_reduction <maximumf>, %17, %cst_13 [1] : vector<8x16xf32> to vector<8xf32>
    %19 = vector.shape_cast %18 : vector<8xf32> to vector<8x1xf32>
    %20 = vector.broadcast %19 : vector<8x1xf32> to vector<8x16xf32>
    %21 = arith.subf %17, %20 : vector<8x16xf32>
    %22 = math.exp %21 : vector<8x16xf32>
    %cst_14 = arith.constant dense<0.000000e+00> : vector<8xf32>
    %23 = vector.multi_reduction <add>, %22, %cst_14 [1] : vector<8x16xf32> to vector<8xf32>
    %24 = vector.shape_cast %23 : vector<8xf32> to vector<8x1xf32>
    %25 = tpu.reciprocal %24 {approx = true} : vector<8x1xf32> -> vector<8x1xf32>
    %26 = vector.broadcast %25 : vector<8x1xf32> to vector<8x16xf32>
    %27 = arith.mulf %22, %26 : vector<8x16xf32>
    %cst_15 = arith.constant dense<0.000000e+00> : vector<8x32xf32>
    %28 = tpu.matmul %27, %16, %cst_15 {dimension_numbers = #tpu.dot_dimension_numbers<[1], [0], [0], [1], [0, 0, 1, 1], [], []>} : vector<8x16xf32>, vector<16x32xf32>, vector<8x32xf32> -> vector<8x32xf32>
    %29 = vector.extract_strided_slice %11 {offsets = [0, 32], sizes = [8, 32], strides = [1, 1]} : vector<8x128xf32> to vector<8x32xf32>
    %30 = vector.extract_strided_slice %12 {offsets = [0, 32], sizes = [16, 32], strides = [1, 1]} : vector<16x128xf32> to vector<16x32xf32>
    %31 = vector.extract_strided_slice %13 {offsets = [0, 32], sizes = [16, 32], strides = [1, 1]} : vector<16x128xf32> to vector<16x32xf32>
    %cst_16 = arith.constant dense<0.000000e+00> : vector<8x16xf32>
    %32 = tpu.matmul %29, %30, %cst_16 {dimension_numbers = #tpu.dot_dimension_numbers<[1], [1], [0], [0], [0, 0, 1, 0], [], []>} : vector<8x32xf32>, vector<16x32xf32>, vector<8x16xf32> -> vector<8x16xf32>
    %cst_17 = arith.constant dense<0xFF800000> : vector<8xf32>
    %33 = vector.multi_reduction <maximumf>, %32, %cst_17 [1] : vector<8x16xf32> to vector<8xf32>
    %34 = vector.shape_cast %33 : vector<8xf32> to vector<8x1xf32>
    %35 = vector.broadcast %34 : vector<8x1xf32> to vector<8x16xf32>
    %36 = arith.subf %32, %35 : vector<8x16xf32>
    %37 = math.exp %36 : vector<8x16xf32>
    %cst_18 = arith.constant dense<0.000000e+00> : vector<8xf32>
    %38 = vector.multi_reduction <add>, %37, %cst_18 [1] : vector<8x16xf32> to vector<8xf32>
    %39 = vector.shape_cast %38 : vector<8xf32> to vector<8x1xf32>
    %40 = tpu.reciprocal %39 {approx = true} : vector<8x1xf32> -> vector<8x1xf32>
    %41 = vector.broadcast %40 : vector<8x1xf32> to vector<8x16xf32>
    %42 = arith.mulf %37, %41 : vector<8x16xf32>
    %cst_19 = arith.constant dense<0.000000e+00> : vector<8x32xf32>
    %43 = tpu.matmul %42, %31, %cst_19 {dimension_numbers = #tpu.dot_dimension_numbers<[1], [0], [0], [1], [0, 0, 1, 1], [], []>} : vector<8x16xf32>, vector<16x32xf32>, vector<8x32xf32> -> vector<8x32xf32>
    %44 = vector.extract_strided_slice %11 {offsets = [0, 64], sizes = [8, 32], strides = [1, 1]} : vector<8x128xf32> to vector<8x32xf32>
    %45 = vector.extract_strided_slice %12 {offsets = [0, 64], sizes = [16, 32], strides = [1, 1]} : vector<16x128xf32> to vector<16x32xf32>
    %46 = vector.extract_strided_slice %13 {offsets = [0, 64], sizes = [16, 32], strides = [1, 1]} : vector<16x128xf32> to vector<16x32xf32>
    %cst_20 = arith.constant dense<0.000000e+00> : vector<8x16xf32>
    %47 = tpu.matmul %44, %45, %cst_20 {dimension_numbers = #tpu.dot_dimension_numbers<[1], [1], [0], [0], [0, 0, 1, 0], [], []>} : vector<8x32xf32>, vector<16x32xf32>, vector<8x16xf32> -> vector<8x16xf32>
    %cst_21 = arith.constant dense<0xFF800000> : vector<8xf32>
    %48 = vector.multi_reduction <maximumf>, %47, %cst_21 [1] : vector<8x16xf32> to vector<8xf32>
    %49 = vector.shape_cast %48 : vector<8xf32> to vector<8x1xf32>
    %50 = vector.broadcast %49 : vector<8x1xf32> to vector<8x16xf32>
    %51 = arith.subf %47, %50 : vector<8x16xf32>
    %52 = math.exp %51 : vector<8x16xf32>
    %cst_22 = arith.constant dense<0.000000e+00> : vector<8xf32>
    %53 = vector.multi_reduction <add>, %52, %cst_22 [1] : vector<8x16xf32> to vector<8xf32>
    %54 = vector.shape_cast %53 : vector<8xf32> to vector<8x1xf32>
    %55 = tpu.reciprocal %54 {approx = true} : vector<8x1xf32> -> vector<8x1xf32>
    %56 = vector.broadcast %55 : vector<8x1xf32> to vector<8x16xf32>
    %57 = arith.mulf %52, %56 : vector<8x16xf32>
    %cst_23 = arith.constant dense<0.000000e+00> : vector<8x32xf32>
    %58 = tpu.matmul %57, %46, %cst_23 {dimension_numbers = #tpu.dot_dimension_numbers<[1], [0], [0], [1], [0, 0, 1, 1], [], []>} : vector<8x16xf32>, vector<16x32xf32>, vector<8x32xf32> -> vector<8x32xf32>
    %59 = vector.extract_strided_slice %11 {offsets = [0, 96], sizes = [8, 32], strides = [1, 1]} : vector<8x128xf32> to vector<8x32xf32>
    %60 = vector.extract_strided_slice %12 {offsets = [0, 96], sizes = [16, 32], strides = [1, 1]} : vector<16x128xf32> to vector<16x32xf32>
    %61 = vector.extract_strided_slice %13 {offsets = [0, 96], sizes = [16, 32], strides = [1, 1]} : vector<16x128xf32> to vector<16x32xf32>
    %cst_24 = arith.constant dense<0.000000e+00> : vector<8x16xf32>
    %62 = tpu.matmul %59, %60, %cst_24 {dimension_numbers = #tpu.dot_dimension_numbers<[1], [1], [0], [0], [0, 0, 1, 0], [], []>} : vector<8x32xf32>, vector<16x32xf32>, vector<8x16xf32> -> vector<8x16xf32>
    %cst_25 = arith.constant dense<0xFF800000> : vector<8xf32>
    %63 = vector.multi_reduction <maximumf>, %62, %cst_25 [1] : vector<8x16xf32> to vector<8xf32>
    %64 = vector.shape_cast %63 : vector<8xf32> to vector<8x1xf32>
    %65 = vector.broadcast %64 : vector<8x1xf32> to vector<8x16xf32>
    %66 = arith.subf %62, %65 : vector<8x16xf32>
    %67 = math.exp %66 : vector<8x16xf32>
    %cst_26 = arith.constant dense<0.000000e+00> : vector<8xf32>
    %68 = vector.multi_reduction <add>, %67, %cst_26 [1] : vector<8x16xf32> to vector<8xf32>
    %69 = vector.shape_cast %68 : vector<8xf32> to vector<8x1xf32>
    %70 = tpu.reciprocal %69 {approx = true} : vector<8x1xf32> -> vector<8x1xf32>
    %71 = vector.broadcast %70 : vector<8x1xf32> to vector<8x16xf32>
    %72 = arith.mulf %67, %71 : vector<8x16xf32>
    %cst_27 = arith.constant dense<0.000000e+00> : vector<8x32xf32>
    %73 = tpu.matmul %72, %61, %cst_27 {dimension_numbers = #tpu.dot_dimension_numbers<[1], [0], [0], [1], [0, 0, 1, 1], [], []>} : vector<8x16xf32>, vector<16x32xf32>, vector<8x32xf32> -> vector<8x32xf32>
    %74 = tpu.concatenate %28, %43, %58, %73 in 1 : vector<8x32xf32>, vector<8x32xf32>, vector<8x32xf32>, vector<8x32xf32> -> vector<8x128xf32>
    %c0_28 = arith.constant 0 : index
    %c0_29 = arith.constant 0 : index
    %75 = vector.load %arg11[%c0_28, %c0_29] : memref<128x128xf32, #tpu.memory_space<vmem>>, vector<128x128xf32>
    %cst_30 = arith.constant dense<0.000000e+00> : vector<8x128xf32>
    %76 = tpu.matmul %74, %75, %cst_30 {dimension_numbers = #tpu.dot_dimension_numbers<[1], [0], [0], [1], [0, 0, 1, 1], [], []>} : vector<8x128xf32>, vector<128x128xf32>, vector<8x128xf32> -> vector<8x128xf32>
    %c0_31 = arith.constant 0 : index
    %c0_32 = arith.constant 0 : index
    %77 = vector.load %arg12[%c0_31, %c0_32] : memref<1x128xf32, #tpu.memory_space<vmem>>, vector<1x128xf32>
    %78 = vector.broadcast %77 : vector<1x128xf32> to vector<8x128xf32>
    %79 = arith.addf %76, %78 : vector<8x128xf32>
    %c0_33 = arith.constant 0 : index
    %c0_34 = arith.constant 0 : index
    %c0_35 = arith.constant 0 : index
    %80 = vector.load %arg13[%c0_33, %c0_34, %c0_35] : memref<1x8x128xf32, #tpu.memory_space<vmem>>, vector<1x8x128xf32>
    %81 = vector.shape_cast %80 : vector<1x8x128xf32> to vector<8x128xf32>
    %82 = vector.shape_cast %79 : vector<8x128xf32> to vector<1x8x128xf32>
    tpu.vector_store %arg13[%c0_33, %c0_34, %c0_35], %82 {strides = array<i32>} : memref<1x8x128xf32, #tpu.memory_space<vmem>>, vector<1x8x128xf32>,
    return
  }
  func.func @transform_0(%arg0: i32, %arg1: i32) -> (i32, i32, i32) {
    %c0_i32 = arith.constant 0 : i32
    %c0_i32_0 = arith.constant 0 : i32
    return %arg0, %arg1, %c0_i32 : i32, i32, i32
  }
  func.func @transform_1(%arg0: i32, %arg1: i32) -> (i32, i32, i32) {
    %c0_i32 = arith.constant 0 : i32
    %c0_i32_0 = arith.constant 0 : i32
    %c0_i32_1 = arith.constant 0 : i32
    return %arg0, %c0_i32, %c0_i32_0 : i32, i32, i32
  }
  func.func @transform_2(%arg0: i32, %arg1: i32) -> (i32, i32, i32) {
    %c0_i32 = arith.constant 0 : i32
    %c0_i32_0 = arith.constant 0 : i32
    %c0_i32_1 = arith.constant 0 : i32
    return %arg0, %c0_i32, %c0_i32_0 : i32, i32, i32
  }
  func.func @transform_3(%arg0: i32, %arg1: i32) -> (i32, i32) {
    %c0_i32 = arith.constant 0 : i32
    %c0_i32_0 = arith.constant 0 : i32
    %c0_i32_1 = arith.constant 0 : i32
    return %c0_i32, %c0_i32_0 : i32, i32
  }
  func.func @transform_4(%arg0: i32, %arg1: i32) -> (i32, i32) {
    %c0_i32 = arith.constant 0 : i32
    %c0_i32_0 = arith.constant 0 : i32
    %c0_i32_1 = arith.constant 0 : i32
    return %c0_i32, %c0_i32_0 : i32, i32
  }
  func.func @transform_5(%arg0: i32, %arg1: i32) -> (i32, i32) {
    %c0_i32 = arith.constant 0 : i32
    %c0_i32_0 = arith.constant 0 : i32
    %c0_i32_1 = arith.constant 0 : i32
    return %c0_i32, %c0_i32_0 : i32, i32
  }
  func.func @transform_6(%arg0: i32, %arg1: i32) -> (i32, i32) {
    %c0_i32 = arith.constant 0 : i32
    %c0_i32_0 = arith.constant 0 : i32
    %c0_i32_1 = arith.constant 0 : i32
    return %c0_i32, %c0_i32_0 : i32, i32
  }
  func.func @transform_7(%arg0: i32, %arg1: i32) -> (i32, i32) {
    %c0_i32 = arith.constant 0 : i32
    %c0_i32_0 = arith.constant 0 : i32
    %c0_i32_1 = arith.constant 0 : i32
    return %c0_i32, %c0_i32_0 : i32, i32
  }
  func.func @transform_8(%arg0: i32, %arg1: i32) -> (i32, i32) {
    %c0_i32 = arith.constant 0 : i32
    %c0_i32_0 = arith.constant 0 : i32
    %c0_i32_1 = arith.constant 0 : i32
    return %c0_i32, %c0_i32_0 : i32, i32
  }
  func.func @transform_9(%arg0: i32, %arg1: i32) -> (i32, i32) {
    %c0_i32 = arith.constant 0 : i32
    %c0_i32_0 = arith.constant 0 : i32
    %c0_i32_1 = arith.constant 0 : i32
    return %c0_i32, %c0_i32_0 : i32, i32
  }
  func.func @transform_10(%arg0: i32, %arg1: i32) -> (i32, i32) {
    %c0_i32 = arith.constant 0 : i32
    %c0_i32_0 = arith.constant 0 : i32
    %c0_i32_1 = arith.constant 0 : i32
    return %c0_i32, %c0_i32_0 : i32, i32
  }
  func.func @transform_11(%arg0: i32, %arg1: i32) -> (i32, i32, i32) {
    %c0_i32 = arith.constant 0 : i32
    %c0_i32_0 = arith.constant 0 : i32
    return %arg0, %arg1, %c0_i32 : i32, i32, i32
  }
}

</mosaic_0001>

<bundles_post_ra>
// kernel: tpu_custom_call.1
= control target key start
LH: loop header
LB: loop body
LE: loop exit
PB: predicated region body
PF: predicated region fallthrough
CT: control target
= control target key end

     0   :  { %s3212_s0 = inlined_call_operand.hbm [shape: f32[2,16,128], index: 0, kind: input, shape index: {}]   ;;  %s3213_s1 = inlined_call_operand.hbm [shape: f32[2,16,128], index: 1, kind: input, shape index: {}]   ;;  %s3214_s2 = inlined_call_operand.hbm [shape: f32[2,16,128], index: 2, kind: input, shape index: {}]   ;;  %s3215_s3 = inlined_call_operand.hbm [shape: f32[128,128], index: 3, kind: input, shape index: {}]   ;;  %s3216_s4 = inlined_call_operand.vmem [shape: f32[1,128], index: 4, kind: input, shape index: {}]   ;;  %s3217_s5 = inlined_call_operand.hbm [shape: f32[128,128], index: 5, kind: input, shape index: {}]   ;;  %s3218_s6 = inlined_call_operand.vmem [shape: f32[1,128], index: 6, kind: input, shape index: {}]   ;;  %s3219_s7 = inlined_call_operand.hbm [shape: f32[128,128], index: 7, kind: input, shape index: {}]   ;;  %s3220_s8 = inlined_call_operand.vmem [shape: f32[1,128], index: 8, kind: input, shape index: {}]   ;;  %s3221_s9 = inlined_call_operand.hbm [shape: f32[128,128], index: 9, kind: input, shape index: {}]   ;;  %s3222_s10 = inlined_call_operand.vmem [shape: f32[1,128], index: 10, kind: input, shape index: {}]   ;;  %s3223_s11 = inlined_call_operand.hbm [shape: f32[2,16,128], index: 11, kind: output, shape index: {}]  }
   0x1   :  { %3241 = sst [smem:[#allocation26_spill]] %s3213_s1 }
   0x2   :  { %3242 = sst [smem:[#allocation27_spill]] %s3214_s2 }
   0x3   :  { %3243 = sst [smem:[#allocation28_spill]] %s3215_s3 }
   0x4   :  { %3244 = sst [smem:[#allocation29_spill]] %s3216_s4 }
   0x5   :  { %3245 = sst [smem:[#allocation30_spill]] %s3217_s5 }
   0x6   :  { %3246 = sst [smem:[#allocation31_spill]] %s3218_s6 }
   0x7   :  { %3247 = sst [smem:[#allocation32_spill]] %s3219_s7 }
   0x8   :  { %3248 = sst [smem:[#allocation33_spill]] %s3220_s8 }
   0x9   :  { %3249 = sst [smem:[#allocation34_spill]] %s3221_s9 }
   0xa   :  { %3250 = sst [smem:[#allocation35_spill]] %s3222_s10 }
   0xb   :  { %3251 = sst [smem:[#allocation36_spill]] %s3223_s11 }
   0xc   :  { %16 = vsyncpa [#allocation5], 0 }
   0xd   :  { %18 = vsyncpa [#allocation5 + $0x1], 0 }
   0xe   :  { %19 = vsyncpa [#allocation8], 0 }
   0xf   :  { %20 = vsyncpa [#allocation11], 0 }
  0x10   :  { %21 = vsyncpa [#allocation14], 0 }
  0x11   :  { %22 = vsyncpa [#allocation6], 0 }
  0x12   :  { %24 = vsyncpa [#allocation6 + $0x1], 0  ;;  %s2701_s17 = smov 0   ;;  %s2703_s18 = smov 0  }
  0x13   :  { %s2705_s19 = smov 0   ;;  %s2707_s20 = smov 0  }
  0x14   :  { %s2709_s21 = smov 0   ;;  %s2711_s22 = smov 0  }
  0x15   :  { %s2713_s23 = smov 0   ;;  %s2715_s24 = smov 0  }
  0x16   :  { %s2717_s25 = smov 0   ;;  %s2719_s26 = smov 0  }
  0x17   :  { %s2721_s27 = smov 0  }
  0x18 LB: > { %3252 = sst [smem:[#allocation22_spill]] %s2588_s18  ;;  %s3224_s28 = sadd.s32 4294967295, %s2624_s27   ;;  %s2624_s27 = sphi %s2721_s27, %s30_s27   ;;  %s2620_s26 = sphi %s2719_s26, %s3300_s26   ;;  %s2616_s25 = sphi %s2717_s25, %s3299_s25   ;;  %s2612_s24 = sphi %s2715_s24, %s3298_s24   ;;  %s2608_s23 = sphi %s2713_s23, %s3297_s23   ;;  %s2604_s22 = sphi %s2711_s22, %s3296_s22   ;;  %s2600_s21 = sphi %s2709_s21, %s3295_s21   ;;  %s2596_s20 = sphi %s2707_s20, %s3294_s20   ;;  %s2592_s19 = sphi %s2705_s19, %s3293_s19   ;;  %s2588_s18 = sphi %s2703_s18, %s3292_s18   ;;  %s2584_s17 = sphi %s2701_s17, %s3289_s17  }
  0x19   : > { %3253 = sst [smem:[#allocation23_spill]] %s2612_s24  ;;  %p90_p0 = scmp.ne.s32.totalorder %s2588_s18, %s2584_s17 }
  0x1a   : > { %p2758_p1 = scmp.eq.s32.totalorder %s3224_s28, 0  ;;  %p1788_p2 = scmp.ge.s32.totalorder %s2624_s27, 1 }
  0x1b   : > { %p323_p3 = scmp.lt.s32.totalorder %s2624_s27, 5  ;;  %s1834_s30 = sshll.u32 %s2612_s24, 8 }
  0x1c   : > { %s3254_s29 = scalar_select %p2758_p1, 1, 0 }
  0x1d   : > { %p2767_p4 = por %p90_p0, %p2758_p1  ;;  %s3256_s1 = sld [smem:[#allocation26_spill]] }
  0x1e   : > { %p2776_p5 = pnand %p1788_p2, %p323_p3  ;;  %s2626_s17 = smov [#allocation7]  }
  0x1f   : > { %s3255_s12 = scalar_select %p2767_p4, 1, 0 }
  0x20   : > { %s3257_s16 = scalar_select %p2776_p5, 1, 0 }
  0x21   : > { %s338_s28 = sshll.u32 %s2626_s17, 4  ;;  %p3228_p6 = pneg %p2776_p5  ;;  %s2782_s28 = int_to_ptr.vmem [resolvable:$true] %s338_s28 }
  0x22   : > { %s3258_s2 = sld [smem:[#allocation27_spill]]  ;;  %s2627_s10 = smov [#allocation10]  }
  0x23   : > { %s2774_s15 = scalar_lea.hbm %s3256_s1, %s1834_s30  ;;  %p2794_p7 = pnand %p3228_p6, %p2767_p4 }
  0x24   : > { %s367_s17 = sshll.u32 %s2627_s10, 4  ;;  %s2304_s24 = scalar_lea.hbm %s2774_s15, 256  ;;  %s368_s17 = int_to_ptr.vmem [resolvable:$true] %s367_s17 }
  0x25   : > { %p2305_p8 = scmp.ne.s32.totalorder %s2774_s15, %s2304_s24  ;;  %p2306_p9 = pneg %p2794_p7 }
  0x26   : > { %s2309_s13 = scalar_lea.hbm %s3256_s1, 512  ;;  %p2310_p12 = scmp.lt.s32.totalorder %s2774_s15, %s3256_s1 }
  0x27   : > { %p2307_p10 = pnand %p2306_p9, %p2305_p8  ;;  %p2311_p13 = scmp.lt.s32.totalorder %s2309_s13, %s2304_s24 }
  0x28   : > { %s2787_s14 = scalar_lea.hbm %s3258_s2, %s1834_s30 }
  0x29   : > { %p2308_p11 = pneg %p2307_p10  ;;  %p2312_p0 = por %p2311_p13, %p2310_p12 }
  0x2b   : > { %p2313_p2 = pnand %p2312_p0, %p2308_p11 }
  0x2d   : > { %2316 = shalt.err (!%p2313_p2)
}
  0x2e   : > { %s2317_s10 = scalar_lea.vmem %s2782_s28, 256  ;;  %p2325_p6 = scmp.lt.s32.totalorder %s2782_s28, %s2782_s28 }
  0x2f   : > { %p2318_p3 = scmp.ne.s32.totalorder %s2782_s28, %s2317_s10  ;;  %p2326_p4 = scmp.lt.s32.totalorder %s2317_s10, %s2317_s10 }
  0x31   : > { %p2320_p8 = pnand %p2318_p3, %p2306_p9  ;;  %p2327_p5 = por %p2326_p4, %p2325_p6 }
  0x33   : > { %p2321_p10 = pneg %p2320_p8 }
  0x35   : > { %p2328_p1 = pnand %p2327_p5, %p2321_p10 }
  0x37   : > { %2331 = shalt.err (!%p2328_p1)
}
  0x38   : > { %s2628_s4 = smov 128   ;;  %s2629_s8 = smov 8  }
  0x39   : > { %2153 = dma.hbm_to_vmem [thread:$0]  (!%p2794_p7), %s2774_s15, 256, %s2782_s28, [#allocation8], %s2628_s4, %s2628_s4, %s2629_s8  }
  0x3a   : > { %p3260_p11 = scmp.ne.s32.totalorder %s3254_s29, 0  ;;  %p3261_p12 = scmp.ne.s32.totalorder %s3257_s16, 0 }
  0x3b   : > { %s2630_s18 = smov [#allocation13]   ;;  %s2343_s13 = scalar_lea.vmem %s368_s17, 2048 }
  0x3c   : > { %p3262_p13 = pneg %p3261_p12  ;;  %s399_s30 = sshll.u32 %s2630_s18, 4  ;;  %s400_s30 = int_to_ptr.vmem [resolvable:$true] %s399_s30 }
  0x3d   : > { %p2344_p4 = scmp.ne.s32.totalorder %s368_s17, %s2343_s13  ;;  %p2351_p2 = scmp.lt.s32.totalorder %s368_s17, %s368_s17 }
  0x3e   : > { %p2831_p0 = pnand %p3262_p13, %p3260_p11  ;;  %p2352_p3 = scmp.lt.s32.totalorder %s2343_s13, %s2343_s13 }
  0x40   : > { %s3263_s24 = scalar_select %p2831_p0, 1, 0 }
  0x41   : > { %p3236_p1 = pneg %p2831_p0  ;;  %p2353_p8 = por %p2352_p3, %p2351_p2 }
  0x43   : > { %p2346_p5 = pnand %p2344_p4, %p3236_p1 }
  0x45   : > { %p2347_p6 = pneg %p2346_p5 }
  0x47   : > { %p2354_p10 = pnand %p2353_p8, %p2347_p6 }
  0x49   : > { %2357 = shalt.err (!%p2354_p10)
}
  0x4a   : > { %s3264_s3 = sld [smem:[#allocation28_spill]]  ;;  %s2631_s10 = smov [#allocation9]  }
  0x4b   : > { %s354_s18 = sshll.u32 %s2631_s10, 4  ;;  %s2369_s1 = scalar_lea.vmem %s400_s30, 2048  ;;  %s355_s18 = int_to_ptr.vmem [resolvable:$true] %s354_s18 }
  0x4c   : > { %p2370_p13 = scmp.ne.s32.totalorder %s400_s30, %s2369_s1  ;;  %p2377_p6 = scmp.lt.s32.totalorder %s400_s30, %s400_s30 }
  0x4d   : > { %p2378_p2 = scmp.lt.s32.totalorder %s2369_s1, %s2369_s1 }
  0x4e   : > { %p2372_p4 = pnand %p2370_p13, %p3236_p1 }
  0x4f   : > { %p2379_p3 = por %p2378_p2, %p2377_p6 }
  0x50   : > { %2159 = dma.hbm_to_vmem [thread:$0]  (!%p2831_p0), %s3264_s3, 2048, %s368_s17, [#allocation11], %s2628_s4, %s2628_s4, %s2629_s8  }
  0x51   : > { %p2373_p5 = pneg %p2372_p4 }
  0x53   : > { %p2380_p8 = pnand %p2379_p3, %p2373_p5 }
  0x55   : > { %2383 = shalt.err (!%p2380_p8)
}
  0x56   : > { %s3265_s7 = sld [smem:[#allocation32_spill]]  ;;  %s2384_s28 = scalar_lea.hbm %s2787_s14, 256 }
  0x57   : > { %p2385_p10 = scmp.ne.s32.totalorder %s2787_s14, %s2384_s28  ;;  %s2389_s10 = scalar_lea.hbm %s3258_s2, 512 }
  0x58   : > { %p2390_p5 = scmp.lt.s32.totalorder %s2787_s14, %s3258_s2  ;;  %p2391_p6 = scmp.lt.s32.totalorder %s2389_s10, %s2384_s28 }
  0x59   : > { %p2387_p13 = pnand %p2385_p10, %p2306_p9 }
  0x5a   : > { %p2392_p2 = por %p2391_p6, %p2390_p5 }
  0x5b   : > { %p2388_p4 = pneg %p2387_p13 }
  0x5c   : > { %2165 = dma.hbm_to_vmem [thread:$0]  (!%p2831_p0), %s3265_s7, 2048, %s400_s30, [#allocation14], %s2628_s4, %s2628_s4, %s2629_s8  }
  0x5d   : > { %p2393_p3 = pnand %p2392_p2, %p2388_p4 }
  0x5f   : > { %2396 = shalt.err (!%p2393_p3)
}
  0x60   : > { %s2397_s30 = scalar_lea.vmem %s355_s18, 256  ;;  %p2405_p13 = scmp.lt.s32.totalorder %s355_s18, %s355_s18 }
  0x61   : > { %p2398_p8 = scmp.ne.s32.totalorder %s355_s18, %s2397_s30  ;;  %p2406_p12 = scmp.lt.s32.totalorder %s2397_s30, %s2397_s30 }
  0x63   : > { %p2400_p1 = pnand %p2398_p8, %p2306_p9  ;;  %p2407_p11 = por %p2406_p12, %p2405_p13 }
  0x65   : > { %p2401_p10 = pneg %p2400_p1 }
  0x67   : > { %p2408_p0 = pnand %p2407_p11, %p2401_p10 }
  0x69   : > { %2411 = shalt.err (!%p2408_p0)
}
  0x6a   : > { %2156 = dma.hbm_to_vmem [thread:$0]  (!%p2794_p7), %s2787_s14, 256, %s355_s18, [#allocation8], %s2628_s4, %s2628_s4, %s2629_s8  }
  0x6b   : > { %s2632_s3 = smov [#allocation12]   ;;  %s2633_s17 = smov [#allocation15]  }
  0x6c   : > { %s383_s6 = sshll.u32 %s2632_s3, 4  ;;  %s415_s13 = sshll.u32 %s2633_s17, 4  ;;  %s384_s6 = int_to_ptr.vmem [resolvable:$true] %s383_s6  ;;  %s416_s13 = int_to_ptr.vmem [resolvable:$true] %s415_s13 }
  0x6d   : > { %s2423_s28 = scalar_lea.vmem %s384_s6, 2048  ;;  %p3266_p1 = scmp.ne.s32.totalorder %s3263_s24, 0 }
  0x6e   : > { %p2424_p9 = scmp.ne.s32.totalorder %s384_s6, %s2423_s28  ;;  %p2431_p0 = scmp.lt.s32.totalorder %s384_s6, %s384_s6 }
  0x6f   : > { %p3267_p4 = pneg %p3266_p1  ;;  %p2432_p5 = scmp.lt.s32.totalorder %s2423_s28, %s2423_s28 }
  0x71   : > { %p2426_p12 = pnand %p2424_p9, %p3267_p4  ;;  %p2433_p6 = por %p2432_p5, %p2431_p0 }
  0x73   : > { %p2427_p11 = pneg %p2426_p12 }
  0x75   : > { %p2434_p2 = pnand %p2433_p6, %p2427_p11 }
  0x77   : > { %2437 = shalt.err (!%p2434_p2)
}
  0x78   : > { %s3268_s5 = sld [smem:[#allocation30_spill]]  ;;  %s2449_s18 = scalar_lea.vmem %s416_s13, 2048 }
  0x79   : > { %p2450_p7 = scmp.ne.s32.totalorder %s416_s13, %s2449_s18  ;;  %p3269_p3 = pmov %p3267_p4 }
  0x7a   : > { %p2457_p13 = scmp.lt.s32.totalorder %s416_s13, %s416_s13  ;;  %p2458_p9 = scmp.lt.s32.totalorder %s2449_s18, %s2449_s18 }
  0x7b   : > { %p2452_p8 = pnand %p2450_p7, %p3269_p3 }
  0x7c   : > { %p2459_p4 = por %p2458_p9, %p2457_p13 }
  0x7d   : > { %p2453_p10 = pneg %p2452_p8 }
  0x7e   : > { %2162 = dma.hbm_to_vmem [thread:$0]  (!%p3266_p1), %s3268_s5, 2048, %s384_s6, [#allocation11], %s2628_s4, %s2628_s4, %s2629_s8  }
  0x7f   : > { %p2460_p12 = pnand %p2459_p4, %p2453_p10 }
  0x81   : > { %2463 = shalt.err (!%p2460_p12)
}
  0x82   : > { %s3270_s9 = sld [smem:[#allocation34_spill]]  ;;  %s1787_s24 = sadd.s32 4294967294, %s2624_s27  }
  0x83   : > { %s39_s10 = sadd.s32 1, %s2616_s25  ;;  %s42_s30 = sadd.s32 1, %s2620_s26 }
  0x84   : > { %p40_p11 = scmp.ge.s32.totalorder %s39_s10, 2  ;;  %s51_s3 = sadd.s32 1, %s2604_s22 }
  0x85   : > { %p58_p0 = scmp.ne.s32.totalorder %s2604_s22, %s2600_s21  ;;  %p59_p5 = scmp.eq.s32.totalorder %s2624_s27, 0 }
  0x86   : > { %s3302_s10 = smov (%p40_p11, %s39_s10), 0  ;;  %s3304_s30 = smov (!%p40_p11, %s42_s30), %s2620_s26 }
  0x87   : > { %3271 = sst [smem:[#allocation24_spill]] %s3302_s10  ;;  %s47_s6 = ssub.s32 %s2616_s25, %s3302_s10 }
  0x88   : > { %2168 = dma.hbm_to_vmem [thread:$0]  (!%p3266_p1), %s3270_s9, 2048, %s416_s13, [#allocation14], %s2628_s4, %s2628_s4, %s2629_s8  }
  0x89   : > { %p2914_p6 = por %p59_p5, %p58_p0  ;;  %p44_p1 = scmp.ge.s32.totalorder %s3304_s30, 2 }
  0x8a   : > { %p64_p2 = scmp.ne.s32.totalorder %s2600_s21, %s2596_s20  ;;  %s77_s4 = sadd.s32 1, %s2592_s19 }
  0x8b   : > { %s3273_s8 = sadd.s32 4294967295, %s2624_s27   ;;  %s3306_s30 = smov (%p44_p1, %s3304_s30), 0 }
  0x8c   : > { %p310_p7 = scmp.eq.s32.totalorder %s3273_s8, 3  ;;  %3274 = sst [smem:[#allocation25_spill]] %s3306_s30 }
  0x8d   : > { %p3275_p3 = scmp.ne.s32.totalorder %s3254_s29, 0  ;;  %s46_s11 = ssub.s32 %s2620_s26, %s3306_s30 }
  0x8e   : > { %p2931_p10 = por %p310_p7, %p58_p0  ;;  %p316_p13 = scmp.eq.s32.totalorder %s1787_s24, 3 }
  0x8f   : > { %p2927_p8 = por %p3275_p3, %p64_p2  ;;  %s48_s14 = sor.u32 %s47_s6, %s46_s11 }
  0x90   : > { %p75_p9 = scmp.eq.s32.totalorder %s46_s11, 0  ;;  %p49_p4 = scmp.eq.s32.totalorder %s48_s14, 0 }
  0x91   : > { %p2937_p12 = por %p316_p13, %p64_p2  ;;  %p2181_p11 = scmp.lt.s32.totalorder %s2624_s27, 4 }
  0x92   : > { %s2942_s1 = scalar_select %p75_p9, %s2592_s19, %s77_s4  }
  0x93   : > { %s2945_s15 = scalar_select %p49_p4, %s2604_s22, %s51_s3  }
  0x94   : > { %s432_s8 = sand.u32 1, %s2604_s22   ;;  %s1799_s5 = sshll.u32 %s2620_s26, 1 }
  0x95   : > { %s1798_s2 = sshll.u32 %s432_s8, 3  ;;  %s441_s7 = sadd.s32 %s2616_s25, %s1799_s5 }
  0x96   : > { %s436_s9 = scalar_lea.vmem [#allocation4], %s1798_s2  ;;  %s1800_s24 = sshll.u32 %s441_s7, 7 }
  0x97   : > { %s445_s30 = sshll.u32 %s436_s9, 4  ;;  %s443_s14 = scalar_lea.hbm %s3212_s0, %s1800_s24  ;;  %s446_s30 = int_to_ptr.vmem [resolvable:$true] %s445_s30 }
  0x98   : > { %p2956_p0 = pnand %p2181_p11, %p2914_p6  ;;  %s433_s3 = scalar_lea.sflag [#allocation5], %s432_s8 }
  0x99   : > { %s2477_s4 = scalar_lea.vmem %s446_s30, 128  ;;  %s2634_s2 = smov [#allocation4]  }
  0x9a   : > { %p2466_p5 = pneg %p2956_p0  ;;  %p2478_p1 = scmp.ne.s32.totalorder %s446_s30, %s2477_s4 }
  0x9b   : > { %s2482_s5 = sshll.u32 %s2634_s2, 4  ;;  %s2483_s5 = int_to_ptr.vmem [resolvable:$false] %s2482_s5 }
  0x9c   : > { %p2480_p2 = pnand %p2478_p1, %p2466_p5  ;;  %s2484_s7 = scalar_lea.vmem %s2483_s5, 256 }
  0x9d   : > { %p2485_p3 = scmp.lt.s32.totalorder %s446_s30, %s2483_s5  ;;  %p2486_p13 = scmp.lt.s32.totalorder %s2484_s7, %s2477_s4 }
  0x9e   : > { %p2481_p7 = pneg %p2480_p2 }
  0x9f   : > { %p2487_p9 = por %p2486_p13, %p2485_p3 }
  0xa1   : > { %p2488_p4 = pnand %p2487_p9, %p2481_p7 }
  0xa3   : > { %2491 = shalt.err (!%p2488_p4)
}
  0xa4   : > { %2172 = dma.hbm_to_vmem [thread:$0]  (!%p2956_p0), %s443_s14, 128, %s446_s30, %s433_s3  }
  0xa5   : > { %p3280_p6 = scmp.ne.s32.totalorder %s3257_s16, 0 }
  0xa6   : > { %s2967_s9 = sand.u32 (!%p3280_p6), 1, %s2600_s21  }
  0xa7   : > { %454 = sbr.rel (%p3280_p6) target bundleno = 3212 (0xc8c), region = 64  ;;  %s1802_s17 = sshll.u32 (!%p3280_p6), %s2967_s9, 3 }
  0xa8   : > { %s457_s8 = scalar_lea.sflag (!%p3280_p6), [#allocation5], %s2967_s9  ;;  %s2971_s24 = scalar_lea.vmem (!%p3280_p6), [#allocation4], %s1802_s17 }
  0xac   : > { %2563 = dma.done.wait (%p2927_p8), %s457_s8, 128  }
  0xad   : > { %2565 = vsyncadd (%p2927_p8), %s457_s8, 4294967168  ;;  %p3281_p11 = scmp.ne.s32.totalorder %s3255_s12, 0 }
  0xaf   : > { %2567 = dma.done.wait (%p3281_p11), [#allocation8], 512  }
  0xb0   : > { %2569 = vsyncadd (%p3281_p11), [#allocation8], 4294966784  ;;  %p3282_p0 = scmp.ne.s32.totalorder %s3254_s29, 0 }
  0xb2   : > { %2571 = dma.done.wait (%p3282_p0), [#allocation11], 4096  }
  0xb3   : > { %2573 = vsyncadd (%p3282_p0), [#allocation11], 4294963200 }
  0xb4   : > { %2575 = dma.done.wait (%p3282_p0), [#allocation14], 4096  }
  0xb5   : > { %2577 = vsyncadd (%p3282_p0), [#allocation14], 4294963200  ;;  %s2989_s16 = scalar_lea.vmem [#allocation16], %s1802_s17  ;;  %p1808_p8 = scmp.ne.s32.totalorder %s2608_s23, 0 }
  0xb6   : > { %s3283_s10 = sld [smem:[#allocation31_spill]] (!%p1808_p8) }
  0xb7   : > { %526 = sbr.rel (%p1808_p8) target bundleno = 421 (0x1a5), region = 96  ;;  %s3284_s6 = sld [smem:[#allocation33_spill]] (!%p1808_p8) }
  0xbc   : > { %v546_v0 = vld [vmem:[#allocation12 + $0x78] sm:$0xff]  ;;  %v545_v2 = vld [vmem:[#allocation12 + $0x70] sm:$0xff]  ;;  %v544_v4 = vld [vmem:[#allocation12 + $0x68] sm:$0xff] }
  0xbd   : > { %v644_v1 = vld [vmem:[#allocation13 + $0x78] sm:$0xff]  ;;  %1930 = vmatprep.subr.mxu0 %v546_v0  ;;  %v643_v3 = vld [vmem:[#allocation13 + $0x70] sm:$0xff]  ;;  %v642_v5 = vld [vmem:[#allocation13 + $0x68] sm:$0xff] }
  0xbe   : > { %1965 = vmatprep.subr.mxu1 %v644_v1  ;;  %1931 = vmatpush3.msra.mxu0 %v546_v0  ;;  %v543_v6 = vld [vmem:[#allocation12 + $0x60] sm:$0xff]  ;;  %v542_v8 = vld [vmem:[#allocation12 + $0x58] sm:$0xff]  ;;  %v541_v10 = vld [vmem:[#allocation12 + $0x50] sm:$0xff] }
  0xbf   : > { %1966 = vmatpush3.msra.mxu1 %v644_v1  ;;  %1932 = vmatprep.subr.mxu0 %v545_v2  ;;  %v641_v7 = vld [vmem:[#allocation13 + $0x60] sm:$0xff]  ;;  %v640_v9 = vld [vmem:[#allocation13 + $0x58] sm:$0xff]  ;;  %v639_v11 = vld [vmem:[#allocation13 + $0x50] sm:$0xff] }
  0xc0   : > { %1967 = vmatprep.subr.mxu1 %v643_v3  ;;  %1933 = vmatpush3.msra.mxu0 %v545_v2  ;;  %v540_v12 = vld [vmem:[#allocation12 + $0x48] sm:$0xff]  ;;  %v539_v14 = vld [vmem:[#allocation12 + $0x40] sm:$0xff]  ;;  %v538_v16 = vld [vmem:[#allocation12 + $0x38] sm:$0xff] }
  0xc1   : > { %1968 = vmatpush3.msra.mxu1 %v643_v3  ;;  %1934 = vmatprep.subr.mxu0 %v544_v4  ;;  %v638_v13 = vld [vmem:[#allocation13 + $0x48] sm:$0xff]  ;;  %v637_v15 = vld [vmem:[#allocation13 + $0x40] sm:$0xff]  ;;  %v636_v17 = vld [vmem:[#allocation13 + $0x38] sm:$0xff] }
  0xc2   : > { %1969 = vmatprep.subr.mxu1 %v642_v5  ;;  %1935 = vmatpush3.msra.mxu0 %v544_v4  ;;  %v537_v18 = vld [vmem:[#allocation12 + $0x30] sm:$0xff]  ;;  %v536_v20 = vld [vmem:[#allocation12 + $0x28] sm:$0xff]  ;;  %v535_v22 = vld [vmem:[#allocation12 + $0x20] sm:$0xff] }
  0xc3   : > { %1970 = vmatpush3.msra.mxu1 %v642_v5  ;;  %1936 = vmatprep.subr.mxu0 %v543_v6  ;;  %v635_v19 = vld [vmem:[#allocation13 + $0x30] sm:$0xff]  ;;  %v634_v21 = vld [vmem:[#allocation13 + $0x28] sm:$0xff]  ;;  %v633_v23 = vld [vmem:[#allocation13 + $0x20] sm:$0xff] }
  0xc4   : > { %1971 = vmatprep.subr.mxu1 %v641_v7  ;;  %1937 = vmatpush3.msra.mxu0 %v543_v6  ;;  %v534_v24 = vld [vmem:[#allocation12 + $0x18] sm:$0xff]  ;;  %v533_v26 = vld [vmem:[#allocation12 + $0x10] sm:$0xff]  ;;  %v532_v28 = vld [vmem:[#allocation12 + $0x8] sm:$0xff] }
  0xc5   : > { %1972 = vmatpush3.msra.mxu1 %v641_v7  ;;  %1938 = vmatprep.subr.mxu0 %v542_v8  ;;  %v632_v25 = vld [vmem:[#allocation13 + $0x18] sm:$0xff]  ;;  %v631_v27 = vld [vmem:[#allocation13 + $0x10] sm:$0xff]  ;;  %v630_v29 = vld [vmem:[#allocation13 + $0x8] sm:$0xff] }
  0xc6   : > { %1973 = vmatprep.subr.mxu1 %v640_v9  ;;  %1939 = vmatpush3.msra.mxu0 %v542_v8  ;;  %v531_v30 = vld [vmem:[#allocation12] sm:$0xff]  ;;  %v529_v33 = vld [vmem:[#allocation9] sm:$0xff]  ;;  %v528_v34 = vld [vmem:[#allocation7 + $0x8] sm:$0xff] }
  0xc7   : > { %1974 = vmatpush3.msra.mxu1 %v640_v9  ;;  %1940 = vmatprep.subr.mxu0 %v541_v10  ;;  %v629_v31 = vld [vmem:[#allocation13] sm:$0xff]  ;;  %v530_v35 = vld [vmem:[#allocation9 + $0x8] sm:$0xff]  ;;  %v1809_v36 = vld [vmem:[%s3283_s10] ss:$0 sm:$0xff] }
  0xc8   : > { %1975 = vmatprep.subr.mxu1 %v639_v11  ;;  %1941 = vmatpush3.msra.mxu0 %v541_v10  ;;  %v527_v32 = vld [vmem:[#allocation7] sm:$0xff]  ;;  %v1810_v37 = vld [vmem:[%s3284_s6] ss:$0 sm:$0xff] }
  0xc9   : > { %1976 = vmatpush3.msra.mxu1 %v639_v11  ;;  %1942 = vmatprep.subr.mxu0 %v540_v12 }
  0xca   : > { %1977 = vmatprep.subr.mxu1 %v638_v13  ;;  %1943 = vmatpush3.msra.mxu0 %v540_v12 }
  0xcb   : > { %1978 = vmatpush3.msra.mxu1 %v638_v13  ;;  %1944 = vmatprep.subr.mxu0 %v539_v14 }
  0xcc   : > { %1979 = vmatprep.subr.mxu1 %v637_v15  ;;  %1945 = vmatpush3.msra.mxu0 %v539_v14 }
  0xcd   : > { %1980 = vmatpush3.msra.mxu1 %v637_v15  ;;  %1946 = vmatprep.subr.mxu0 %v538_v16 }
  0xce   : > { %1981 = vmatprep.subr.mxu1 %v636_v17  ;;  %1947 = vmatpush3.msra.mxu0 %v538_v16 }
  0xcf   : > { %1982 = vmatpush3.msra.mxu1 %v636_v17  ;;  %1948 = vmatprep.subr.mxu0 %v537_v18 }
  0xd0   : > { %1983 = vmatprep.subr.mxu1 %v635_v19  ;;  %1949 = vmatpush3.msra.mxu0 %v537_v18 }
  0xd1   : > { %1984 = vmatpush3.msra.mxu1 %v635_v19  ;;  %1950 = vmatprep.subr.mxu0 %v536_v20 }
  0xd2   : > { %1985 = vmatprep.subr.mxu1 %v634_v21  ;;  %1951 = vmatpush3.msra.mxu0 %v536_v20 }
  0xd3   : > { %1986 = vmatpush3.msra.mxu1 %v634_v21  ;;  %1952 = vmatprep.subr.mxu0 %v535_v22 }
  0xd4   : > { %1987 = vmatprep.subr.mxu1 %v633_v23  ;;  %1953 = vmatpush3.msra.mxu0 %v535_v22 }
  0xd5   : > { %1988 = vmatpush3.msra.mxu1 %v633_v23  ;;  %1954 = vmatprep.subr.mxu0 %v534_v24 }
  0xd6   : > { %1989 = vmatprep.subr.mxu1 %v632_v25  ;;  %1955 = vmatpush3.msra.mxu0 %v534_v24 }
  0xd7   : > { %1990 = vmatpush3.msra.mxu1 %v632_v25  ;;  %1956 = vmatprep.subr.mxu0 %v533_v26 }
  0xd8   : > { %1991 = vmatprep.subr.mxu1 %v631_v27  ;;  %1957 = vmatpush3.msra.mxu0 %v533_v26 }
  0xd9   : > { %1992 = vmatpush3.msra.mxu1 %v631_v27  ;;  %1958 = vmatprep.subr.mxu0 %v532_v28 }
  0xda   : > { %1993 = vmatprep.subr.mxu1 %v630_v29  ;;  %1959 = vmatpush3.msra.mxu0 %v532_v28 }
  0xdb   : > { %1994 = vmatpush3.msra.mxu1 %v630_v29  ;;  %1960 = vmatprep.subr.mxu0 %v531_v30 }
  0xdc   : > { %1995 = vmatprep.subr.mxu1 %v629_v31  ;;  %1961 = vmatpush3.msra.mxu0 %v531_v30 }
  0xdd   : > { %1962 = vmatprep.mubr.f32.mxu0 %v527_v32  ;;  %1996 = vmatpush3.msra.mxu1 %v629_v31 }
  0xde   : > { %1997 = vmatprep.mubr.f32.mxu1 %v529_v33  ;;  %1963 = vmatmul.mubr.f32.vlgmr.msra.gmra.mxu0 %v528_v34 }
  0xdf   : > { %1998 = vmatmul.mubr.f32.vlgmr.msra.gmra.mxu1 %v530_v35 }
 0x19e   : > { %v1964_v38 = vpop.f32.mrf.mxu0 }
 0x19f   : > { %v1999_v39 = vpop.f32.mrf.mxu1  ;;  %v626_v40 = vadd.f32 %v1964_v38, %v1809_v36 }
 0x1a0   : > { %v724_v41 = vadd.f32 %v1999_v39, %v1810_v37  ;;  %v620_v42 = vpop.f32.mrf.mxu0 }
 0x1a1   : > { %v718_v43 = vpop.f32.mrf.mxu1  ;;  %728 = vst [vmem:[#allocation2 + $0x8] sm:$0xff] %v626_v40  ;;  %v621_v44 = vadd.f32 %v1809_v36, %v620_v42 }
 0x1a2   : > { %730 = vst [vmem:[#allocation3] sm:$0xff] %v724_v41  ;;  %v719_v45 = vadd.f32 %v1810_v37, %v718_v43 }
 0x1a3   : > { %727 = vst [vmem:[#allocation2] sm:$0xff] %v621_v44 }
 0x1a4   : > { %729 = vst [vmem:[#allocation3 + $0x8] sm:$0xff] %v719_v45 }
 0x1a5 PF: > { %v747_v46 = vld [vmem:[#allocation10 + $0x78] sm:$0xff]  ;;  %v2635_v47 = vmov 0.0   ;;  %v746_v48 = vld [vmem:[#allocation10 + $0x70] sm:$0xff]  ;;  %vm2636_vm0 = vmmov 0   ;;  %v745_v49 = vld [vmem:[#allocation10 + $0x68] sm:$0xff]  ;;  %vm830_vm1 = vcmask 261120  }
 0x1a6   : > { %2000 = vmatprep.subr.mxu0 %v2635_v47  ;;  %2032 = vmatprep.mubr.msk.f32.mxu0 %vm2636_vm0, %v2635_v47  ;;  %v744_v50 = vld [vmem:[#allocation10 + $0x60] sm:$0xff]  ;;  %v743_v52 = vld [vmem:[#allocation10 + $0x58] sm:$0xff]  ;;  %v742_v53 = vld [vmem:[#allocation10 + $0x50] sm:$0xff]  ;;  %s3285_s3 = sld [smem:[#allocation29_spill]]  ;;  %vm910_vm2 = vcmask 130048   ;;  %s2637_s4 = smov 96  }
 0x1a7   : > { %2001 = vmatpush3.msra.mxu0 %v747_v46  ;;  %2035 = vmatprep.subr.mxu1 %v2635_v47  ;;  %v741_v54 = vld [vmem:[#allocation10 + $0x48] sm:$0xff]  ;;  %v740_v55 = vld [vmem:[#allocation10 + $0x40] sm:$0xff]  ;;  %v739_v56 = vld [vmem:[#allocation10 + $0x38] sm:$0xff]  ;;  %s2638_s2 = smov 64   ;;  %s2639_s5 = smov 32   ;;  %vm1526_vm3 = vcmask 523264  }
 0x1a8   : > { %2002 = vmatprep.subr.mxu0 %v2635_v47  ;;  %2039 = vmatprep.mubr.msk.f32.mxu1 %vm2636_vm0, %v2635_v47  ;;  %v3006_v51 = vld [vmem:[#allocation2 + $0x8] sm:$0xff]  ;;  %v738_v57 = vld [vmem:[#allocation10 + $0x30] sm:$0xff]  ;;  %v737_v58 = vld [vmem:[#allocation10 + $0x28] sm:$0xff]  ;;  %s3286_s7 = sld [smem:[#allocation23_spill]]  ;;  %vm1528_vm4 = vcmask 785408   ;;  %s1640_s30 = sshll.u32 %s2989_s16, 4  ;;  %s1641_s30 = int_to_ptr.vmem [resolvable:$true] %s1640_s30 }
 0x1a9   : > { %2003 = vmatpush3.msra.mxu0 %v746_v48  ;;  %2036 = vmatpush3.xpose.msk.msra.mxu1 %vm830_vm1, %v3006_v51  ;;  %v736_v59 = vld [vmem:[#allocation10 + $0x20] sm:$0xff]  ;;  %v735_v60 = vld [vmem:[#allocation10 + $0x18] sm:$0xff]  ;;  %v734_v61 = vld [vmem:[#allocation10 + $0x10] sm:$0xff]  ;;  %s3287_s12 = sld [smem:[#allocation35_spill]] }
 0x1aa   : > { %2004 = vmatprep.subr.mxu0 %v2635_v47  ;;  %2037 = vmatprep.subr.mxu1 %v2635_v47  ;;  %v733_v62 = vld [vmem:[#allocation10 + $0x8] sm:$0xff]  ;;  %v732_v63 = vld [vmem:[#allocation10] sm:$0xff]  ;;  %v731_v0 = vld [vmem:[%s2971_s24] sm:$0xff]  ;;  %s3288_s11 = sld [smem:[#allocation36_spill]] }
 0x1ab   : > { %2005 = vmatpush3.msra.mxu0 %v745_v49  ;;  %v3028_v1 = vld [vmem:[#allocation2] sm:$0xff]  ;;  %999 = vrot.lane.b32.xlu1 %v3006_v51, %s2637_s4  ;;  %v3048_v15 = vld [vmem:[#allocation3] sm:$0xff]  ;;  %v3050_v16 = vld [vmem:[#allocation3 + $0x8] sm:$0xff] }
 0x1ac   : > { %2006 = vmatprep.subr.mxu0 %v2635_v47  ;;  %v1811_v2 = vld [vmem:[%s3285_s3] ss:$0 sm:$0xff]  ;;  %s1625_s3 = scalar_lea.sflag [#allocation6], %s2967_s9 }
 0x1ad   : > { %2007 = vmatpush3.msra.mxu0 %v744_v50  ;;  %2038 = vmatpush3.xpose.msk.msra.mxu1 %vm830_vm1, %v3028_v1 }
 0x1ae   : > { %2008 = vmatprep.subr.mxu0 %v2635_v47  ;;  %2042 = vmatprep.subr.mxu1 %v2635_v47  ;;  %s1830_s17 = sshll.u32 %s3286_s7, 1 }
 0x1af   : > { %2009 = vmatpush3.msra.mxu0 %v743_v52  ;;  %997 = vrot.lane.b32.xlu1 %v3028_v1, %s2637_s4  ;;  %s1636_s8 = sadd.s32 %s2608_s23, %s1830_s17  ;;  %s2640_s23 = smov [#allocation16]  }
 0x1b0   : > { %2010 = vmatprep.subr.mxu0 %v2635_v47  ;;  %s1831_s10 = sshll.u32 %s1636_s8, 7 }
 0x1b1   : > { %2011 = vmatpush3.msra.mxu0 %v742_v53  ;;  %s3155_s14 = scalar_lea.hbm %s3288_s11, %s1831_s10 }
 0x1b2   : > { %2012 = vmatprep.subr.mxu0 %v2635_v47 }
 0x1b3   : > { %2013 = vmatpush3.msra.mxu0 %v741_v54 }
 0x1b4   : > { %2014 = vmatprep.subr.mxu0 %v2635_v47 }
 0x1b5   : > { %2015 = vmatpush3.msra.mxu0 %v740_v55 }
 0x1b6   : > { %2016 = vmatprep.subr.mxu0 %v2635_v47 }
 0x1b7   : > { %2017 = vmatpush3.msra.mxu0 %v739_v56 }
 0x1b8   : > { %2018 = vmatprep.subr.mxu0 %v2635_v47 }
 0x1b9   : > { %2019 = vmatpush3.msra.mxu0 %v738_v57 }
 0x1ba   : > { %2020 = vmatprep.subr.mxu0 %v2635_v47 }
 0x1bb   : > { %2021 = vmatpush3.msra.mxu0 %v737_v58 }
 0x1bc   : > { %2022 = vmatprep.subr.mxu0 %v2635_v47 }
 0x1bd   : > { %2023 = vmatpush3.msra.mxu0 %v736_v59 }
 0x1be   : > { %2024 = vmatprep.subr.mxu0 %v2635_v47 }
 0x1bf   : > { %2025 = vmatpush3.msra.mxu0 %v735_v60 }
 0x1c0   : > { %2026 = vmatprep.subr.mxu0 %v2635_v47 }
 0x1c1   : > { %2027 = vmatpush3.msra.mxu0 %v734_v61 }
 0x1c2   : > { %2028 = vmatprep.subr.mxu0 %v2635_v47 }
 0x1c3   : > { %2029 = vmatpush3.msra.mxu0 %v733_v62 }
 0x1c4   : > { %2030 = vmatprep.subr.mxu0 %v2635_v47 }
 0x1c5   : > { %2031 = vmatpush3.msra.mxu0 %v732_v63 }
 0x1c6   : > { %2033 = vmatmul.mubr.f32.vlgmr.msra.gmra.mxu0 %v731_v0  ;;  %2091 = vmatprep.subr.mxu0 %v2635_v47 }
 0x1c7   : > { %2123 = vmatprep.mubr.msk.f32.mxu0 %vm2636_vm0, %v2635_v47 }
 0x21d   : > { %v1000_v18 = vpop.permute.xlu1 %999 }
 0x221   : > { %v998_v21 = vpop.permute.xlu1 %997 }
 0x286   : > { %v821_v3 = vpop.f32.mrf.mxu0 }
 0x287   : > { %v822_v4 = vadd.f32 %v1811_v2, %v821_v3 }
 0x288   : > { %v2034_v5 = vpop.f32.mrf.mxu0 }
 0x289   : > { %v3036_v6 = vmul.f32 0.17677669, %v822_v4 }
 0x28b   : > { %2040 = vmatmul.mubr.msk.f32.vlgmr.msra.gmra.mxu1 %vm830_vm1, %v3036_v6 }
 0x28c   : > { %2046 = vmatprep.mubr.msk.f32.mxu1 %vm2636_vm0, %v2635_v47  ;;  %2043 = vmatpush3.msra.mxu1 %v3048_v15 }
 0x28d   : > { %2044 = vmatprep.subr.mxu1 %v2635_v47 }
 0x28e   : > { %2045 = vmatpush3.msra.mxu1 %v3050_v16 }
 0x28f   : > { %2049 = vmatprep.subr.mxu1 %v2635_v47 }
 0x34b   : > { %v906_v7 = vpop.f32.mrf.mxu1 }
 0x34c   : > { %v911_v8 = vsel %vm910_vm2, %v906_v7, -inf }
 0x34d   : > { %912 = vmax.xlane.f32.xlu0 %v911_v8  ;;  %v2041_v9 = vpop.f32.mrf.mxu1 }
 0x3d6   : > { %v913_v10 = vpop.xlane.xlu0 %912 }
 0x3d7   : > { %v914_v11 = vsub.f32 %v906_v7, %v913_v10 }
 0x3d9   : > { %v915_v12 = vmul.f32 1.442695, %v914_v11  ;;  %v1545_v11 = vld [vmem:[#allocation15 + $0x78] sm:$0xff] }
 0x3da   : > { %2092 = vmatpush3.msra.mxu0 %v1545_v11 }
 0x3db   : > { %2288 = vpow2.f32 %v915_v12  ;;  %v1544_v12 = vld [vmem:[#allocation15 + $0x70] sm:$0xff]  ;;  %2093 = vmatprep.subr.mxu0 %v2635_v47 }
 0x3dc   : > { %2094 = vmatpush3.msra.mxu0 %v1544_v12 }
 0x3dd   : > { %2095 = vmatprep.subr.mxu0 %v2635_v47 }
 0x3e8   : > { %v2289_v13 = vpop.eup %2288 }
 0x3e9   : > { %v917_v14 = vsel %vm910_vm2, %v2289_v13, 0.0 }
 0x3ea   : > { %918 = vadd.xlane.f32.xlu0 %v917_v14  ;;  %v1542_v14 = vld [vmem:[#allocation15 + $0x60] sm:$0xff] }
 0x400   : > { %995 = vrot.lane.b32.xlu0 %v3036_v6, %s2637_s4 }
 0x473   : > { %v919_v17 = vpop.xlane.xlu0 %918 }
 0x474   : > { %2290 = vrcp.f32 %v919_v17  ;;  %v1539_v17 = vld [vmem:[#allocation15 + $0x48] sm:$0xff] }
 0x477   : > { %v996_v22 = vpop.permute.xlu0 %995 }
 0x481   : > { %v2291_v19 = vpop.eup %2290 }
 0x482   : > { %v921_v20 = vmul.f32 %v2291_v19, %v2289_v13  ;;  %v1543_v13 = vld [vmem:[#allocation15 + $0x68] sm:$0xff]  ;;  %v1537_v19 = vld [vmem:[#allocation15 + $0x38] sm:$0xff] }
 0x483   : > { %2096 = vmatpush3.msra.mxu0 %v1543_v13 }
 0x484   : > { %2047 = vmatmul.mubr.msk.f32.vlgmr.msra.gmra.mxu1 %vm910_vm2, %v921_v20  ;;  %2097 = vmatprep.subr.mxu0 %v2635_v47  ;;  %v1536_v20 = vld [vmem:[#allocation15 + $0x30] sm:$0xff] }
 0x485   : > { %2050 = vmatpush3.xpose.msk.msra.mxu1 %vm830_vm1, %v1000_v18  ;;  %2053 = vmatprep.mubr.msk.f32.mxu1 %vm2636_vm0, %v2635_v47  ;;  %v1538_v18 = vld [vmem:[#allocation15 + $0x40] sm:$0xff] }
 0x486   : > { %2051 = vmatprep.subr.mxu1 %v2635_v47  ;;  %2098 = vmatpush3.msra.mxu0 %v1542_v14 }
 0x487   : > { %2099 = vmatprep.subr.mxu0 %v2635_v47 }
 0x489   : > { %2052 = vmatpush3.xpose.msk.msra.mxu1 %vm830_vm1, %v998_v21  ;;  %v1535_v21 = vld [vmem:[#allocation15 + $0x28] sm:$0xff] }
 0x48a   : > { %2056 = vmatprep.subr.mxu1 %v2635_v47 }
 0x48c   : > { %2054 = vmatmul.mubr.msk.f32.vlgmr.msra.gmra.mxu1 %vm830_vm1, %v996_v22  ;;  %v1534_v22 = vld [vmem:[#allocation15 + $0x20] sm:$0xff] }
 0x48d   : > { %2060 = vmatprep.mubr.msk.f32.mxu1 %vm2636_vm0, %v2635_v47 }
 0x544   : > { %v3068_v23 = vpop.f32.mrf.mxu1 }
 0x546   : > { %v2048_v24 = vpop.f32.mrf.mxu1 }
 0x547   : > { %v1533_v24 = vld [vmem:[#allocation15 + $0x18] sm:$0xff] }
 0x54c   : > { %v1073_v25 = vpop.f32.mrf.mxu1 }
 0x54d   : > { %v1077_v26 = vsel %vm910_vm2, %v1073_v25, -inf }
 0x54e   : > { %1078 = vmax.xlane.f32.xlu1 %v1077_v26  ;;  %v2055_v27 = vpop.f32.mrf.mxu1  ;;  %v1531_v26 = vld [vmem:[#allocation15 + $0x8] sm:$0xff] }
 0x54f   : > { %v1530_v27 = vld [vmem:[#allocation15] sm:$0xff] }
 0x55f   : > { %1092 = vrot.lane.b32.xlu1 %v3048_v15, %s2637_s4 }
 0x563   : > { %1173 = vrot.lane.b32.xlu1 %v3006_v51, %s2638_s2 }
 0x567   : > { %1171 = vrot.lane.b32.xlu1 %v3028_v1, %s2638_s2 }
 0x56b   : > { %1169 = vrot.lane.b32.xlu1 %v3036_v6, %s2638_s2 }
 0x5d7   : > { %v1079_v28 = vpop.xlane.xlu1 %1078 }
 0x5d8   : > { %v1080_v29 = vsub.f32 %v1073_v25, %v1079_v28  ;;  %v1532_v25 = vld [vmem:[#allocation15 + $0x10] sm:$0xff] }
 0x5da   : > { %v1081_v30 = vmul.f32 1.442695, %v1080_v29 }
 0x5db   : > { %v1093_v31 = vpop.permute.xlu1 %1092 }
 0x5dc   : > { %2292 = vpow2.f32 %v1081_v30  ;;  %2057 = vmatpush3.msra.mxu1 %v1093_v31 }
 0x5dd   : > { %2058 = vmatprep.subr.mxu1 %v2635_v47 }
 0x5df   : > { %v1174_v36 = vpop.permute.xlu1 %1173 }
 0x5e3   : > { %v1172_v39 = vpop.permute.xlu1 %1171 }
 0x5e7   : > { %v1170_v40 = vpop.permute.xlu1 %1169 }
 0x5e9   : > { %v2293_v32 = vpop.eup %2292 }
 0x5ea   : > { %v1083_v33 = vsel %vm910_vm2, %v2293_v32, 0.0 }
 0x5eb   : > { %1084 = vadd.xlane.f32.xlu0 %v1083_v33 }
 0x601   : > { %1090 = vrot.lane.b32.xlu0 %v3050_v16, %s2637_s4 }
 0x674   : > { %v1085_v34 = vpop.xlane.xlu0 %1084 }
 0x675   : > { %2294 = vrcp.f32 %v1085_v34 }
 0x678   : > { %v1091_v35 = vpop.permute.xlu0 %1090 }
 0x679   : > { %2059 = vmatpush3.msra.mxu1 %v1091_v35  ;;  %v1828_v35 = vld [vmem:[%s3287_s12] ss:$0 sm:$0xff] }
 0x67a   : > { %2063 = vmatprep.subr.mxu1 %v2635_v47 }
 0x682   : > { %v2295_v37 = vpop.eup %2294 }
 0x683   : > { %v1087_v38 = vmul.f32 %v2295_v37, %v2293_v32 }
 0x685   : > { %2061 = vmatmul.mubr.msk.f32.vlgmr.msra.gmra.mxu1 %vm910_vm2, %v1087_v38 }
 0x686   : > { %2064 = vmatpush3.xpose.msk.msra.mxu1 %vm830_vm1, %v1174_v36  ;;  %2067 = vmatprep.mubr.msk.f32.mxu1 %vm2636_vm0, %v2635_v47 }
 0x687   : > { %2065 = vmatprep.subr.mxu1 %v2635_v47 }
 0x68a   : > { %2066 = vmatpush3.xpose.msk.msra.mxu1 %vm830_vm1, %v1172_v39 }
 0x68b   : > { %2070 = vmatprep.subr.mxu1 %v2635_v47 }
 0x68d   : > { %2068 = vmatmul.mubr.msk.f32.vlgmr.msra.gmra.mxu1 %vm830_vm1, %v1170_v40 }
 0x68e   : > { %2074 = vmatprep.mubr.msk.f32.mxu1 %vm2636_vm0, %v2635_v47 }
 0x745   : > { %v1165_v41 = vpop.f32.mrf.mxu1 }
 0x747   : > { %v2062_v42 = vpop.f32.mrf.mxu1 }
 0x74d   : > { %v1247_v43 = vpop.f32.mrf.mxu1 }
 0x74e   : > { %v1251_v44 = vsel %vm910_vm2, %v1247_v43, -inf }
 0x74f   : > { %1252 = vmax.xlane.f32.xlu1 %v1251_v44  ;;  %v2069_v45 = vpop.f32.mrf.mxu1 }
 0x760   : > { %1264 = vrot.lane.b32.xlu1 %v3048_v15, %s2638_s2 }
 0x764   : > { %1345 = vrot.lane.b32.xlu1 %v3006_v51, %s2639_s5 }
 0x768   : > { %1343 = vrot.lane.b32.xlu1 %v3028_v1, %s2639_s5 }
 0x76c   : > { %1341 = vrot.lane.b32.xlu1 %v3036_v6, %s2639_s5 }
 0x7d8   : > { %v1253_v46 = vpop.xlane.xlu1 %1252 }
 0x7d9   : > { %v1254_v48 = vsub.f32 %v1247_v43, %v1253_v46 }
 0x7db   : > { %v1255_v49 = vmul.f32 1.442695, %v1254_v48 }
 0x7dc   : > { %v1265_v50 = vpop.permute.xlu1 %1264 }
 0x7dd   : > { %2296 = vpow2.f32 %v1255_v49  ;;  %2071 = vmatpush3.msra.mxu1 %v1265_v50 }
 0x7de   : > { %2072 = vmatprep.subr.mxu1 %v2635_v47 }
 0x7e0   : > { %v1346_v55 = vpop.permute.xlu1 %1345 }
 0x7e4   : > { %v1344_v58 = vpop.permute.xlu1 %1343 }
 0x7e8   : > { %v1342_v59 = vpop.permute.xlu1 %1341 }
 0x7ea   : > { %v2297_v52 = vpop.eup %2296 }
 0x7eb   : > { %v1257_v53 = vsel %vm910_vm2, %v2297_v52, 0.0 }
 0x7ec   : > { %1258 = vadd.xlane.f32.xlu0 %v1257_v53 }
 0x802   : > { %1262 = vrot.lane.b32.xlu0 %v3050_v16, %s2638_s2 }
 0x875   : > { %v1259_v51 = vpop.xlane.xlu0 %1258 }
 0x876   : > { %2298 = vrcp.f32 %v1259_v51 }
 0x879   : > { %v1263_v54 = vpop.permute.xlu0 %1262 }
 0x87a   : > { %2073 = vmatpush3.msra.mxu1 %v1263_v54 }
 0x87b   : > { %2077 = vmatprep.subr.mxu1 %v2635_v47 }
 0x883   : > { %v2299_v56 = vpop.eup %2298 }
 0x884   : > { %v1261_v57 = vmul.f32 %v2299_v56, %v2297_v52 }
 0x886   : > { %2075 = vmatmul.mubr.msk.f32.vlgmr.msra.gmra.mxu1 %vm910_vm2, %v1261_v57 }
 0x887   : > { %2078 = vmatpush3.xpose.msk.msra.mxu1 %vm830_vm1, %v1346_v55  ;;  %2081 = vmatprep.mubr.msk.f32.mxu1 %vm2636_vm0, %v2635_v47 }
 0x888   : > { %2079 = vmatprep.subr.mxu1 %v2635_v47 }
 0x88b   : > { %2080 = vmatpush3.xpose.msk.msra.mxu1 %vm830_vm1, %v1344_v58 }
 0x88c   : > { %2084 = vmatprep.subr.mxu1 %v2635_v47 }
 0x88e   : > { %2082 = vmatmul.mubr.msk.f32.vlgmr.msra.gmra.mxu1 %vm830_vm1, %v1342_v59 }
 0x88f   : > { %2088 = vmatprep.mubr.msk.f32.mxu1 %vm2636_vm0, %v2635_v47 }
 0x946   : > { %v1337_v60 = vpop.f32.mrf.mxu1 }
 0x948   : > { %v2076_v61 = vpop.f32.mrf.mxu1 }
 0x94e   : > { %v1419_v62 = vpop.f32.mrf.mxu1 }
 0x94f   : > { %v1423_v63 = vsel %vm910_vm2, %v1419_v62, -inf }
 0x950   : > { %1424 = vmax.xlane.f32.xlu0 %v1423_v63  ;;  %v2083_v0 = vpop.f32.mrf.mxu1 }
 0x966   : > { %1436 = vrot.lane.b32.xlu0 %v3048_v15, %s2639_s5  ;;  %v1541_v15 = vld [vmem:[#allocation15 + $0x58] sm:$0xff] }
 0x967   : > { %2100 = vmatpush3.msra.mxu0 %v1541_v15 }
 0x968   : > { %2101 = vmatprep.subr.mxu0 %v2635_v47 }
 0x96a   : > { %1514 = vrot.lane.b32.xlu0 %v1165_v41, %s2639_s5 }
 0x9d9   : > { %v1425_v1 = vpop.xlane.xlu0 %1424 }
 0x9da   : > { %v1426_v2 = vsub.f32 %v1419_v62, %v1425_v1 }
 0x9dc   : > { %v1427_v3 = vmul.f32 1.442695, %v1426_v2 }
 0x9dd   : > { %v1437_v4 = vpop.permute.xlu0 %1436 }
 0x9de   : > { %2300 = vpow2.f32 %v1427_v3  ;;  %2085 = vmatpush3.msra.mxu1 %v1437_v4 }
 0x9df   : > { %2086 = vmatprep.subr.mxu1 %v2635_v47 }
 0x9e1   : > { %v1515_v30 = vpop.permute.xlu0 %1514 }
 0x9e2   : > { %v1525_v32 = vsel %vm830_vm1, %v3068_v23, %v1515_v30 }
 0x9eb   : > { %v2301_v5 = vpop.eup %2300 }
 0x9ec   : > { %v1429_v6 = vsel %vm910_vm2, %v2301_v5, 0.0 }
 0x9ed   : > { %1430 = vadd.xlane.f32.xlu1 %v1429_v6 }
 0x9fe   : > { %1434 = vrot.lane.b32.xlu1 %v3050_v16, %s2639_s5  ;;  %v1540_v16 = vld [vmem:[#allocation15 + $0x50] sm:$0xff] }
 0x9ff   : > { %2102 = vmatpush3.msra.mxu0 %v1540_v16 }
 0xa00   : > { %2103 = vmatprep.subr.mxu0 %v2635_v47 }
 0xa01   : > { %2104 = vmatpush3.msra.mxu0 %v1539_v17 }
 0xa02   : > { %1518 = vrot.lane.b32.xlu1 %v1337_v60, %s2638_s2  ;;  %2105 = vmatprep.subr.mxu0 %v2635_v47  ;;  %s2496_s2 = sshll.u32 %s2640_s23, 4  ;;  %s2497_s2 = int_to_ptr.vmem [resolvable:$false] %s2496_s2 }
 0xa03   : > { %2106 = vmatpush3.msra.mxu0 %v1538_v18  ;;  %s2498_s5 = scalar_lea.vmem %s2497_s2, 256  ;;  %p2499_p7 = scmp.lt.s32.totalorder %s1641_s30, %s2497_s2 }
 0xa04   : > { %2107 = vmatprep.subr.mxu0 %v2635_v47 }
 0xa05   : > { %2108 = vmatpush3.msra.mxu0 %v1537_v19 }
 0xa06   : > { %2109 = vmatprep.subr.mxu0 %v2635_v47 }
 0xa07   : > { %2110 = vmatpush3.msra.mxu0 %v1536_v20 }
 0xa08   : > { %2111 = vmatprep.subr.mxu0 %v2635_v47 }
 0xa09   : > { %2112 = vmatpush3.msra.mxu0 %v1535_v21 }
 0xa0a   : > { %2113 = vmatprep.subr.mxu0 %v2635_v47 }
 0xa0b   : > { %2114 = vmatpush3.msra.mxu0 %v1534_v22 }
 0xa0c   : > { %2115 = vmatprep.subr.mxu0 %v2635_v47 }
 0xa0d   : > { %2116 = vmatpush3.msra.mxu0 %v1533_v24 }
 0xa0e   : > { %2117 = vmatprep.subr.mxu0 %v2635_v47 }
 0xa0f   : > { %2118 = vmatpush3.msra.mxu0 %v1532_v25 }
 0xa10   : > { %2119 = vmatprep.subr.mxu0 %v2635_v47 }
 0xa11   : > { %2120 = vmatpush3.msra.mxu0 %v1531_v26 }
 0xa12   : > { %2121 = vmatprep.subr.mxu0 %v2635_v47 }
 0xa13   : > { %2122 = vmatpush3.msra.mxu0 %v1530_v27 }
 0xa76   : > { %v1431_v7 = vpop.xlane.xlu1 %1430 }
 0xa77   : > { %2302 = vrcp.f32 %v1431_v7 }
 0xa7a   : > { %v1435_v8 = vpop.permute.xlu1 %1434 }
 0xa7b   : > { %2087 = vmatpush3.msra.mxu1 %v1435_v8 }
 0xa7e   : > { %v1519_v31 = vpop.permute.xlu1 %1518 }
 0xa7f   : > { %v1527_v33 = vsel %vm1526_vm3, %v1525_v32, %v1519_v31 }
 0xa84   : > { %v2303_v9 = vpop.eup %2302 }
 0xa85   : > { %v1433_v10 = vmul.f32 %v2303_v9, %v2301_v5 }
 0xa87   : > { %2089 = vmatmul.mubr.msk.f32.vlgmr.msra.gmra.mxu1 %vm910_vm2, %v1433_v10 }
 0xb47   : > { %v1509_v28 = vpop.f32.mrf.mxu1 }
 0xb48   : > { %1522 = vrot.lane.b32.xlu0 %v1509_v28, %s2637_s4  ;;  %s2492_s4 = scalar_lea.vmem %s1641_s30, 128 }
 0xb49   : > { %v2090_v29 = vpop.f32.mrf.mxu1  ;;  %p2493_p5 = scmp.ne.s32.totalorder %s1641_s30, %s2492_s4  ;;  %p2500_p3 = scmp.lt.s32.totalorder %s2498_s5, %s2492_s4 }
 0xb4b   : > { %p2494_p1 = pnand %p2493_p5, %p2931_p10  ;;  %p2501_p13 = por %p2500_p3, %p2499_p7 }
 0xb4d   : > { %p2495_p2 = pneg %p2494_p1 }
 0xb4f   : > { %p2502_p9 = pnand %p2501_p13, %p2495_p2 }
 0xbba   : > { %v1523_v34 = vpop.permute.xlu0 %1522 }
 0xbbb   : > { %v1529_v47 = vsel %vm1528_vm4, %v1527_v33, %v1523_v34 }
 0xbbc   : > { %2124 = vmatmul.mubr.f32.vlgmr.msra.gmra.mxu0 %v1529_v47 }
 0xc7c   : > { %v1619_v36 = vpop.f32.mrf.mxu0 }
 0xc7d   : > { %v1620_v37 = vadd.f32 %v1828_v35, %v1619_v36 }
 0xc7e   : > { %v2125_v23 = vpop.f32.mrf.mxu0 }
 0xc7f   : > { %1623 = vst [vmem:[%s2989_s16] sm:$0xff] %v1620_v37 }
 0xc80   : > { %2505 = shalt.err (!%p2502_p9)
}
 0xc81   : > { %s2506_s16 = scalar_lea.hbm %s3155_s14, 128  ;;  %s2510_s17 = scalar_lea.hbm %s3288_s11, 512 }
 0xc82   : > { %p2507_p4 = scmp.ne.s32.totalorder %s3155_s14, %s2506_s16  ;;  %p2511_p0 = scmp.lt.s32.totalorder %s3155_s14, %s3288_s11 }
 0xc83   : > { %p2512_p8 = scmp.lt.s32.totalorder %s2510_s17, %s2506_s16 }
 0xc84   : > { %p2508_p6 = pnand %p2507_p4, %p2931_p10 }
 0xc85   : > { %p2513_p5 = por %p2512_p8, %p2511_p0 }
 0xc86   : > { %p2509_p11 = pneg %p2508_p6 }
 0xc88   : > { %p2514_p1 = pnand %p2513_p5, %p2509_p11 }
 0xc8a   : > { %2517 = shalt.err (!%p2514_p1)
}
 0xc8b   : > { %2148 = dma.vmem_to_hbm [thread:$0]  (%p2931_p10), %s1641_s30, 128, %s3155_s14, %s1625_s3  }
 0xc8c PF: > { %p2186_p2 = scmp.ge.s32.totalorder %s2624_s27, 2  ;;  %s1652_s29 = sand.u32 1, %s2596_s20  }
 0xc8d   : > { %s1653_s12 = scalar_lea.sflag [#allocation6], %s1652_s29 }
 0xc8e   : > { %p2174_p7 = pnand %p2186_p2, %p2937_p12 }
 0xc90   : > { %p2175_p3 = pneg %p2174_p7 }
 0xc92   : > { %2579 = dma.done.wait (%p2175_p3), %s1653_s12, 128  }
 0xc93   : > { %2581 = vsyncadd (%p2175_p3), %s1653_s12, 4294967168  ;;  %s30_s27 = sadd.s32 1, %s2624_s27   ;;  %s3289_s17 = sld [smem:[#allocation22_spill]] }
 0xc94   : > { %p27_p13 = scmp.ge.s32.totalorder %s30_s27, 6   ;;  %s3290_s28 = sld [smem:[#allocation24_spill]] }
 0xc95   : > { %s3291_s10 = sld [smem:[#allocation25_spill]]  ;;  %s3292_s18 = smov %s2592_s19 }
 0xc96   : > { %s3293_s19 = smov %s2942_s1  ;;  %s3294_s20 = smov %s2600_s21 }
 0xc97   : > { %s3295_s21 = smov %s2604_s22  ;;  %s3296_s22 = smov %s2945_s15 }
 0xc98   : > { %s3297_s23 = smov %s2616_s25  ;;  %s3298_s24 = smov %s2620_s26 }
 0xc99   :  { %29 = sbr.rel (!%p27_p13) target bundleno = 24 (0x18), region = 139 }
 0xc9a   : > { %s3299_s25 = smov %s3290_s28 }
 0xc9b   : > { %s3300_s26 = smov %s3291_s10 }
 0xc9e   :  { %1658 = vsyncpa [#allocation5], 1 }
 0xc9f   :  { %1660 = vsyncpa [#allocation5 + $0x1], 1 }
 0xca0   :  { %1661 = vsyncpa [#allocation8], 1 }
 0xca1   :  { %1662 = vsyncpa [#allocation11], 1 }
 0xca2   :  { %1663 = vsyncpa [#allocation14], 1 }
 0xca3   :  { %1664 = vsyncpa [#allocation6], 1 }
 0xca4   :  { %1666 = vsyncpa [#allocation6 + $0x1], 1 }

// kernel: tpu_custom_call.1
= control target key start
LH: loop header
LB: loop body
LE: loop exit
PB: predicated region body
PF: predicated region fallthrough
CT: control target
= control target key end

     0   :  { %s3278_s0 = inlined_call_operand.hbm [shape: f32[2,16,128], index: 0, kind: input, shape index: {}]   ;;  %s3279_s1 = inlined_call_operand.hbm [shape: f32[2,16,128], index: 1, kind: input, shape index: {}]   ;;  %s3280_s2 = inlined_call_operand.hbm [shape: f32[2,16,128], index: 2, kind: input, shape index: {}]   ;;  %s3281_s3 = inlined_call_operand.hbm [shape: f32[128,128], index: 3, kind: input, shape index: {}]   ;;  %s3282_s4 = inlined_call_operand.vmem [shape: f32[1,128], index: 4, kind: input, shape index: {}]   ;;  %s3283_s5 = inlined_call_operand.hbm [shape: f32[128,128], index: 5, kind: input, shape index: {}]   ;;  %s3284_s6 = inlined_call_operand.vmem [shape: f32[1,128], index: 6, kind: input, shape index: {}]   ;;  %s3285_s7 = inlined_call_operand.hbm [shape: f32[128,128], index: 7, kind: input, shape index: {}]   ;;  %s3286_s8 = inlined_call_operand.vmem [shape: f32[1,128], index: 8, kind: input, shape index: {}]   ;;  %s3287_s9 = inlined_call_operand.hbm [shape: f32[128,128], index: 9, kind: input, shape index: {}]   ;;  %s3288_s10 = inlined_call_operand.vmem [shape: f32[1,128], index: 10, kind: input, shape index: {}]   ;;  %s3289_s11 = inlined_call_operand.hbm [shape: f32[2,16,128], index: 11, kind: output, shape index: {}]  }
   0x1   :  { %3309 = sst [smem:[#allocation31_spill]] %s3279_s1 }
   0x2   :  { %3310 = sst [smem:[#allocation32_spill]] %s3280_s2 }
   0x3   :  { %3311 = sst [smem:[#allocation33_spill]] %s3281_s3 }
   0x4   :  { %3312 = sst [smem:[#allocation34_spill]] %s3282_s4 }
   0x5   :  { %3313 = sst [smem:[#allocation35_spill]] %s3283_s5 }
   0x6   :  { %3314 = sst [smem:[#allocation36_spill]] %s3284_s6 }
   0x7   :  { %3315 = sst [smem:[#allocation37_spill]] %s3285_s7 }
   0x8   :  { %3316 = sst [smem:[#allocation38_spill]] %s3286_s8 }
   0x9   :  { %3317 = sst [smem:[#allocation39_spill]] %s3287_s9 }
   0xa   :  { %3318 = sst [smem:[#allocation40_spill]] %s3288_s10 }
   0xb   :  { %3319 = sst [smem:[#allocation41_spill]] %s3289_s11 }
   0xc   :  { %16 = vsyncpa [#allocation5], 0 }
   0xd   :  { %18 = vsyncpa [#allocation5 + $0x1], 0 }
   0xe   :  { %19 = vsyncpa [#allocation8], 0 }
   0xf   :  { %21 = vsyncpa [#allocation8 + $0x1], 0 }
  0x10   :  { %22 = vsyncpa [#allocation11], 0 }
  0x11   :  { %23 = vsyncpa [#allocation14], 0 }
  0x12   :  { %24 = vsyncpa [#allocation6], 0 }
  0x13   :  { %26 = vsyncpa [#allocation6 + $0x1], 0  ;;  %s2755_s17 = smov 0   ;;  %s2757_s18 = smov 0  }
  0x14   :  { %s2759_s19 = smov 0   ;;  %s2761_s20 = smov 0  }
  0x15   :  { %s2763_s21 = smov 0   ;;  %s2765_s22 = smov 0  }
  0x16   :  { %s2767_s23 = smov 0   ;;  %s2769_s24 = smov 0  }
  0x17   :  { %s2771_s25 = smov 0   ;;  %s2773_s26 = smov 0  }
  0x18   :  { %s2775_s27 = smov 0  }
  0x19 LB: > { %3320 = sst [smem:[#allocation22_spill]] %s2642_s18  ;;  %s2811_s28 = sadd.s32 4294967295, %s2678_s27   ;;  %s2678_s27 = sphi %s2775_s27, %s32_s27   ;;  %s2674_s26 = sphi %s2773_s26, %s3380_s26   ;;  %s2670_s25 = sphi %s2771_s25, %s3379_s25   ;;  %s2666_s24 = sphi %s2769_s24, %s3378_s24   ;;  %s2662_s23 = sphi %s2767_s23, %s3377_s23   ;;  %s2658_s22 = sphi %s2765_s22, %s3376_s22   ;;  %s2654_s21 = sphi %s2763_s21, %s3375_s21   ;;  %s2650_s20 = sphi %s2761_s20, %s3374_s20   ;;  %s2646_s19 = sphi %s2759_s19, %s3373_s19   ;;  %s2642_s18 = sphi %s2757_s18, %s3372_s18   ;;  %s2638_s17 = sphi %s2755_s17, %s3369_s17  }
  0x1a   : > { %3321 = sst [smem:[#allocation23_spill]] %s2650_s20  ;;  %p1840_p0 = scmp.ge.s32.totalorder %s2678_s27, 1 }
  0x1b   : > { %3322 = sst [smem:[#allocation24_spill]] %s2662_s23  ;;  %p3296_p1 = scmp.eq.s32.totalorder %s2811_s28, 0 }
  0x1c   : > { %3323 = sst [smem:[#allocation25_spill]] %s2666_s24  ;;  %p325_p2 = scmp.lt.s32.totalorder %s2678_s27, 5 }
  0x1d   : > { %s2680_s30 = smov [#allocation10]   ;;  %s2681_s14 = smov [#allocation13]  }
  0x1e   : > { %p2816_p3 = pnand %p1840_p0, %p325_p2  ;;  %s337_s12 = sshll.u32 %s2680_s30, 4  ;;  %s338_s12 = int_to_ptr.vmem [resolvable:$true] %s337_s12 }
  0x1f   : > { %s369_s15 = sshll.u32 %s2681_s14, 4  ;;  %s2369_s16 = scalar_lea.vmem %s338_s12, 2048  ;;  %s370_s15 = int_to_ptr.vmem [resolvable:$true] %s369_s15 }
  0x20   : > { %s3324_s29 = scalar_select %p2816_p3, 1, 0 }
  0x21   : > { %p2206_p4 = pneg %p2816_p3  ;;  %p2370_p7 = scmp.ne.s32.totalorder %s338_s12, %s2369_s16 }
  0x22   : > { %3325 = sst [smem:[#allocation26_spill]] %s3324_s29  ;;  %p2377_p10 = scmp.lt.s32.totalorder %s338_s12, %s338_s12 }
  0x23   : > { %p2824_p5 = pnand %p2206_p4, %p3296_p1  ;;  %p2378_p11 = scmp.lt.s32.totalorder %s2369_s16, %s2369_s16 }
  0x25   : > { %p2360_p6 = pneg %p2824_p5  ;;  %p2379_p12 = por %p2378_p11, %p2377_p10 }
  0x27   : > { %p2372_p8 = pnand %p2370_p7, %p2360_p6 }
  0x29   : > { %p2373_p9 = pneg %p2372_p8 }
  0x2b   : > { %p2380_p13 = pnand %p2379_p12, %p2373_p9 }
  0x2d   : > { %2383 = shalt.err (!%p2380_p13)
}
  0x2e   : > { %s3291_s30 = smov 128   ;;  %s3293_s11 = smov 8  }
  0x2f   : > { %s3327_s3 = sld [smem:[#allocation33_spill]]  ;;  %s2395_s24 = scalar_lea.vmem %s370_s15, 2048 }
  0x30   : > { %p2396_p0 = scmp.ne.s32.totalorder %s370_s15, %s2395_s24  ;;  %p2403_p7 = scmp.lt.s32.totalorder %s370_s15, %s370_s15 }
  0x31   : > { %p2404_p8 = scmp.lt.s32.totalorder %s2395_s24, %s2395_s24 }
  0x32   : > { %p2398_p2 = pnand %p2396_p0, %p2360_p6 }
  0x33   : > { %p2405_p9 = por %p2404_p8, %p2403_p7 }
  0x34   : > { %p2399_p4 = pneg %p2398_p2 }
  0x35   : > { %2209 = dma.hbm_to_vmem [thread:$0]  (!%p2824_p5), %s3327_s3, 2048, %s338_s12, [#allocation11], %s3291_s30, %s3291_s30, %s3293_s11  }
  0x36   : > { %p2406_p10 = pnand %p2405_p9, %p2399_p4 }
  0x38   : > { %2409 = shalt.err (!%p2406_p10)
}
  0x39   : > { %s3328_s7 = sld [smem:[#allocation37_spill]]  ;;  %p61_p11 = scmp.eq.s32.totalorder %s2678_s27, 0 }
  0x3a   : > { %p86_p12 = scmp.ne.s32.totalorder %s2646_s19, %s2642_s18  ;;  %p92_p13 = scmp.ne.s32.totalorder %s2642_s18, %s2638_s17 }
  0x3b   : > { %p3295_p0 = scmp.lt.s32.totalorder %s2678_s27, 4  ;;  %s422_s4 = sand.u32 1, %s2678_s27  }
  0x3c   : > { %p88_p2 = por %p86_p12, %p61_p11  ;;  %p2863_p4 = por %p92_p13, %p3296_p1 }
  0x3d   : > { %s424_s24 = sand.u32 1, %s2646_s19   ;;  %s1890_s12 = sshll.u32 %s2674_s26, 8 }
  0x3e   : > { %s3329_s10 = scalar_select %p2863_p4, 1, 0 }
  0x3f   : > { %2215 = dma.hbm_to_vmem [thread:$0]  (!%p2824_p5), %s3328_s7, 2048, %s370_s15, [#allocation14], %s3291_s30, %s3291_s30, %s3293_s11  }
  0x40   : > { %3330 = sst [smem:[#allocation27_spill]] %s3329_s10  ;;  %s1849_s14 = sshll.u32 %s424_s24, 4 }
  0x41   : > { %s3331_s1 = sld [smem:[#allocation31_spill]]  ;;  %p2874_p7 = pnand %p3295_p0, %p88_p2 }
  0x42   : > { %s426_s17 = scalar_lea.vmem [#allocation7], %s1849_s14  ;;  %s2878_s11 = scalar_lea.sflag [#allocation8], %s422_s4 }
  0x43   : > { %s433_s30 = sshll.u32 %s426_s17, 4  ;;  %p3301_p8 = pneg %p2874_p7  ;;  %s434_s30 = int_to_ptr.vmem [resolvable:$true] %s433_s30 }
  0x44   : > { %s2423_s7 = scalar_lea.vmem %s434_s30, 256  ;;  %s2684_s3 = smov [#allocation7]  }
  0x45   : > { %p2424_p9 = scmp.ne.s32.totalorder %s434_s30, %s2423_s7  ;;  %s2428_s24 = sshll.u32 %s2684_s3, 4  ;;  %s2429_s24 = int_to_ptr.vmem [resolvable:$false] %s2428_s24 }
  0x46   : > { %s2430_s16 = scalar_lea.vmem %s2429_s24, 512  ;;  %p2431_p13 = scmp.lt.s32.totalorder %s434_s30, %s2429_s24 }
  0x47   : > { %s432_s8 = scalar_lea.hbm %s3331_s1, %s1890_s12  ;;  %p2426_p10 = pnand %p2424_p9, %p3301_p8 }
  0x48   : > { %p2432_p2 = scmp.lt.s32.totalorder %s2430_s16, %s2423_s7 }
  0x49   : > { %p2427_p12 = pneg %p2426_p10 }
  0x4a   : > { %p2433_p0 = por %p2432_p2, %p2431_p13 }
  0x4c   : > { %p2434_p1 = pnand %p2433_p0, %p2427_p12 }
  0x4e   : > { %2437 = shalt.err (!%p2434_p1)
}
  0x4f   : > { %s3333_s4 = smov 8   ;;  %s3334_s17 = smov 128  }
  0x50   : > { %2225 = dma.hbm_to_vmem [thread:$0]  (!%p2874_p7), %s432_s8, 256, %s434_s30, %s2878_s11, %s3334_s17, %s3334_s17, %s3333_s4  }
  0x51   : > { %s3335_s2 = sld [smem:[#allocation32_spill]]  ;;  %s447_s3 = scalar_lea.vmem [#allocation9], %s1849_s14 }
  0x52   : > { %s454_s10 = sshll.u32 %s447_s3, 4  ;;  %s2685_s7 = smov [#allocation12]   ;;  %s2896_s10 = int_to_ptr.vmem [resolvable:$true] %s454_s10 }
  0x53   : > { %s353_s24 = sshll.u32 %s2685_s7, 4  ;;  %s2686_s16 = smov [#allocation15]   ;;  %s354_s24 = int_to_ptr.vmem [resolvable:$true] %s353_s24 }
  0x54   : > { %s385_s18 = sshll.u32 %s2686_s16, 4  ;;  %s2449_s29 = scalar_lea.vmem %s354_s24, 2048  ;;  %s386_s18 = int_to_ptr.vmem [resolvable:$true] %s385_s18 }
  0x55   : > { %p2450_p1 = scmp.ne.s32.totalorder %s354_s24, %s2449_s29  ;;  %p2457_p10 = scmp.lt.s32.totalorder %s354_s24, %s354_s24 }
  0x56   : > { %p2458_p12 = scmp.lt.s32.totalorder %s2449_s29, %s2449_s29 }
  0x57   : > { %s2894_s23 = scalar_lea.hbm %s3335_s2, %s1890_s12  ;;  %p2452_p0 = pnand %p2450_p1, %p2360_p6 }
  0x58   : > { %p2459_p13 = por %p2458_p12, %p2457_p10 }
  0x59   : > { %p2453_p9 = pneg %p2452_p0 }
  0x5b   : > { %p2460_p2 = pnand %p2459_p13, %p2453_p9 }
  0x5d   : > { %2463 = shalt.err (!%p2460_p2)
}
  0x5e   : > { %s3336_s5 = sld [smem:[#allocation35_spill]]  ;;  %s2475_s8 = scalar_lea.vmem %s386_s18, 2048 }
  0x5f   : > { %p2476_p8 = scmp.ne.s32.totalorder %s386_s18, %s2475_s8  ;;  %p2483_p10 = scmp.lt.s32.totalorder %s386_s18, %s386_s18 }
  0x60   : > { %p2484_p9 = scmp.lt.s32.totalorder %s2475_s8, %s2475_s8 }
  0x61   : > { %p2478_p1 = pnand %p2476_p8, %p2360_p6 }
  0x62   : > { %p2485_p12 = por %p2484_p9, %p2483_p10 }
  0x63   : > { %p2479_p0 = pneg %p2478_p1 }
  0x64   : > { %2212 = dma.hbm_to_vmem [thread:$0]  (!%p2824_p5), %s3336_s5, 2048, %s354_s24, [#allocation11], %s3334_s17, %s3334_s17, %s3333_s4  }
  0x65   : > { %p2486_p13 = pnand %p2485_p12, %p2479_p0 }
  0x67   : > { %2489 = shalt.err (!%p2486_p13)
}
  0x68   : > { %s3337_s9 = sld [smem:[#allocation39_spill]]  ;;  %s1839_s13 = sadd.s32 4294967294, %s2678_s27  }
  0x69   : > { %s41_s12 = sadd.s32 1, %s2670_s25  ;;  %s44_s14 = sadd.s32 1, %s2674_s26 }
  0x6a   : > { %p42_p6 = scmp.ge.s32.totalorder %s41_s12, 2  ;;  %s53_s3 = sadd.s32 1, %s2658_s22 }
  0x6b   : > { %p60_p8 = scmp.ne.s32.totalorder %s2658_s22, %s2654_s21  ;;  %p66_p2 = scmp.ne.s32.totalorder %s2654_s21, %s2650_s20 }
  0x6c   : > { %s3382_s12 = smov (%p42_p6, %s41_s12), 0  ;;  %s3384_s14 = smov (!%p42_p6, %s44_s14), %s2674_s26 }
  0x6d   : > { %3338 = sst [smem:[#allocation28_spill]] %s3382_s12  ;;  %s49_s7 = ssub.s32 %s2670_s25, %s3382_s12 }
  0x6e   : > { %2218 = dma.hbm_to_vmem [thread:$0]  (!%p2824_p5), %s3337_s9, 2048, %s386_s18, [#allocation14], %s3334_s17, %s3334_s17, %s3333_s4  }
  0x6f   : > { %p2935_p5 = por %p61_p11, %p60_p8  ;;  %p46_p1 = scmp.ge.s32.totalorder %s3384_s14, 2 }
  0x70   : > { %p3340_p0 = scmp.eq.s32.totalorder %s2811_s28, 0  ;;  %s79_s16 = sadd.s32 1, %s2646_s19 }
  0x71   : > { %p312_p9 = scmp.eq.s32.totalorder %s2811_s28, 3  ;;  %s3386_s14 = smov (%p46_p1, %s3384_s14), 0 }
  0x72   : > { %p2944_p10 = por %p3340_p0, %p66_p2  ;;  %3342 = sst [smem:[#allocation29_spill]] %s3386_s14 }
  0x73   : > { %p2952_p12 = por %p312_p9, %p60_p8  ;;  %p318_p11 = scmp.eq.s32.totalorder %s1839_s13, 3 }
  0x74   : > { %s48_s6 = ssub.s32 %s2674_s26, %s3386_s14  ;;  %s402_s8 = sand.u32 1, %s2658_s22  }
  0x75   : > { %s3343_s1 = scalar_select %p2952_p12, 1, 0 }
  0x76   : > { %s50_s29 = sor.u32 %s49_s7, %s48_s6  ;;  %p77_p13 = scmp.eq.s32.totalorder %s48_s6, 0 }
  0x77   : > { %3344 = sst [smem:[#allocation30_spill]] %s3343_s1  ;;  %p51_p6 = scmp.eq.s32.totalorder %s50_s29, 0 }
  0x78   : > { %p2962_p0 = por %p318_p11, %p66_p2  ;;  %s1846_s13 = sshll.u32 %s402_s8, 3 }
  0x79   : > { %s2967_s2 = scalar_select %p77_p13, %s2646_s19, %s79_s16  }
  0x7a   : > { %s3345_s30 = scalar_select %p2962_p0, 1, 0 }
  0x7b   : > { %s2970_s5 = scalar_select %p51_p6, %s2658_s22, %s53_s3  }
  0x7c   : > { %s1847_s9 = sshll.u32 %s2674_s26, 1  ;;  %s406_s12 = scalar_lea.vmem [#allocation4], %s1846_s13 }
  0x7d   : > { %s411_s14 = sadd.s32 %s2670_s25, %s1847_s9  ;;  %s415_s7 = sshll.u32 %s406_s12, 4  ;;  %s2976_s7 = int_to_ptr.vmem [resolvable:$true] %s415_s7 }
  0x7e   : > { %s1848_s1 = sshll.u32 %s411_s14, 7  ;;  %p3346_p8 = scmp.lt.s32.totalorder %s2678_s27, 4 }
  0x7f   : > { %s2981_s20 = scalar_lea.hbm %s3278_s0, %s1848_s1  ;;  %s2503_s16 = scalar_lea.vmem %s2896_s10, 256 }
  0x80   : > { %p2987_p2 = pnand %p3346_p8, %p2935_p5  ;;  %p2504_p1 = scmp.ne.s32.totalorder %s2896_s10, %s2503_s16 }
  0x81   : > { %p3348_p9 = pneg %p2874_p7  ;;  %s2687_s9 = smov [#allocation9]  }
  0x82   : > { %s2508_s12 = sshll.u32 %s2687_s9, 4  ;;  %s2509_s12 = int_to_ptr.vmem [resolvable:$false] %s2508_s12 }
  0x83   : > { %p2506_p11 = pnand %p2504_p1, %p3348_p9  ;;  %s2510_s14 = scalar_lea.vmem %s2509_s12, 512 }
  0x84   : > { %p2511_p6 = scmp.lt.s32.totalorder %s2896_s10, %s2509_s12  ;;  %p2512_p0 = scmp.lt.s32.totalorder %s2510_s14, %s2503_s16 }
  0x85   : > { %p2507_p13 = pneg %p2506_p11 }
  0x86   : > { %p2513_p12 = por %p2512_p0, %p2511_p6 }
  0x88   : > { %p2514_p4 = pnand %p2513_p12, %p2507_p13 }
  0x8a   : > { %2517 = shalt.err (!%p2514_p4)
}
  0x8b   : > { %2228 = dma.hbm_to_vmem [thread:$0]  (!%p2874_p7), %s2894_s23, 256, %s2896_s10, %s2878_s11, %s3334_s17, %s3334_s17, %s3333_s4  }
  0x8c   : > { %s403_s18 = scalar_lea.sflag [#allocation5], %s402_s8  ;;  %p2520_p5 = pneg %p2987_p2 }
  0x8d   : > { %s2531_s1 = scalar_lea.vmem %s2976_s7, 128  ;;  %s2688_s15 = smov [#allocation4]  }
  0x8e   : > { %p2532_p4 = scmp.ne.s32.totalorder %s2976_s7, %s2531_s1  ;;  %s2536_s13 = sshll.u32 %s2688_s15, 4  ;;  %s2537_s13 = int_to_ptr.vmem [resolvable:$false] %s2536_s13 }
  0x8f   : > { %s2538_s6 = scalar_lea.vmem %s2537_s13, 256  ;;  %p2539_p8 = scmp.lt.s32.totalorder %s2976_s7, %s2537_s13 }
  0x90   : > { %p2534_p12 = pnand %p2532_p4, %p2520_p5  ;;  %p2540_p1 = scmp.lt.s32.totalorder %s2538_s6, %s2531_s1 }
  0x92   : > { %p2535_p0 = pneg %p2534_p12  ;;  %p2541_p9 = por %p2540_p1, %p2539_p8 }
  0x94   : > { %p2542_p11 = pnand %p2541_p9, %p2535_p0 }
  0x96   : > { %2545 = shalt.err (!%p2542_p11)
}
  0x97   : > { %2222 = dma.hbm_to_vmem [thread:$0]  (!%p2987_p2), %s2981_s20, 128, %s2976_s7, %s403_s18  }
  0x98   : > { %466 = sbr.rel (%p2816_p3) target bundleno = 3211 (0xc8b), region = 64  ;;  %s3019_s23 = sand.u32 (!%p2816_p3), 1, %s2654_s21  }
  0x99   : > { %s1856_s10 = sshll.u32 (!%p2816_p3), %s3019_s23, 3  ;;  %s469_s4 = scalar_lea.sflag (!%p2816_p3), [#allocation5], %s3019_s23 }
  0x9a   : > { %s3023_s17 = scalar_lea.vmem (!%p2816_p3), [#allocation4], %s1856_s10 }
  0x9d   : > { %2617 = dma.done.wait (%p2944_p10), %s469_s4, 128  }
  0x9e   : > { %2619 = vsyncadd (%p2944_p10), %s469_s4, 4294967168  ;;  %s3350_s20 = sld [smem:[#allocation22_spill]]  ;;  %s477_s7 = sand.u32 1, %s2811_s28  }
  0x9f   : > { %s3351_s8 = sld [smem:[#allocation27_spill]]  ;;  %s478_s16 = scalar_lea.sflag [#allocation8], %s477_s7 }
  0xa4   : > { %s479_s29 = sand.u32 1, %s3350_s20  }
  0xa5   : > { %s3031_s3 = sshll.u32 %s479_s29, 4  ;;  %p3352_p3 = scmp.ne.s32.totalorder %s3351_s8, 0 }
  0xa6   : > { %s481_s9 = scalar_lea.vmem [#allocation7], %s3031_s3 }
  0xa7   : > { %2621 = dma.done.wait (%p3352_p3), %s478_s16, 512  }
  0xa8   : > { %2623 = vsyncadd (%p3352_p3), %s478_s16, 4294966784  ;;  %s490_s12 = scalar_lea.vmem [#allocation9], %s3031_s3  ;;  %p3353_p7 = scmp.eq.s32.totalorder %s2811_s28, 0 }
  0xaa   : > { %2625 = dma.done.wait (%p3353_p7), [#allocation11], 4096   ;;  %p3354_p10 = pmov %p3353_p7 }
  0xab   : > { %p3355_p2 = pmov %p3353_p7 }
  0xac   : > { %2627 = vsyncadd (%p3354_p10), [#allocation11], 4294963200 }
  0xad   : > { %2629 = dma.done.wait (%p3355_p2), [#allocation14], 4096   ;;  %p3356_p13 = pmov %p3355_p2 }
  0xae   : > { %s3047_s24 = scalar_lea.vmem [#allocation16], %s1856_s10  ;;  %s3357_s14 = sld [smem:[#allocation24_spill]] }
  0xaf   : > { %2631 = vsyncadd (%p3356_p13), [#allocation14], 4294963200 }
  0xb4   : > { %p1864_p6 = scmp.ne.s32.totalorder %s3357_s14, 0 }
  0xb5   : > { %s3358_s1 = sld [smem:[#allocation36_spill]] (!%p1864_p6) }
  0xb6   : > { %558 = sbr.rel (%p1864_p6) target bundleno = 420 (0x1a4), region = 96  ;;  %s3359_s6 = sld [smem:[#allocation38_spill]] (!%p1864_p6) }
  0xbb   : > { %v578_v0 = vld [vmem:[#allocation12 + $0x78] sm:$0xff]  ;;  %v577_v2 = vld [vmem:[#allocation12 + $0x70] sm:$0xff]  ;;  %v576_v4 = vld [vmem:[#allocation12 + $0x68] sm:$0xff] }
  0xbc   : > { %v676_v1 = vld [vmem:[#allocation13 + $0x78] sm:$0xff]  ;;  %1986 = vmatprep.subr.mxu0 %v578_v0  ;;  %v675_v3 = vld [vmem:[#allocation13 + $0x70] sm:$0xff]  ;;  %v674_v5 = vld [vmem:[#allocation13 + $0x68] sm:$0xff] }
  0xbd   : > { %2021 = vmatprep.subr.mxu1 %v676_v1  ;;  %1987 = vmatpush3.msra.mxu0 %v578_v0  ;;  %v575_v6 = vld [vmem:[#allocation12 + $0x60] sm:$0xff]  ;;  %v574_v8 = vld [vmem:[#allocation12 + $0x58] sm:$0xff]  ;;  %v573_v10 = vld [vmem:[#allocation12 + $0x50] sm:$0xff] }
  0xbe   : > { %2022 = vmatpush3.msra.mxu1 %v676_v1  ;;  %1988 = vmatprep.subr.mxu0 %v577_v2  ;;  %v673_v7 = vld [vmem:[#allocation13 + $0x60] sm:$0xff]  ;;  %v672_v9 = vld [vmem:[#allocation13 + $0x58] sm:$0xff]  ;;  %v671_v11 = vld [vmem:[#allocation13 + $0x50] sm:$0xff] }
  0xbf   : > { %2023 = vmatprep.subr.mxu1 %v675_v3  ;;  %1989 = vmatpush3.msra.mxu0 %v577_v2  ;;  %v572_v12 = vld [vmem:[#allocation12 + $0x48] sm:$0xff]  ;;  %v571_v14 = vld [vmem:[#allocation12 + $0x40] sm:$0xff]  ;;  %v570_v16 = vld [vmem:[#allocation12 + $0x38] sm:$0xff] }
  0xc0   : > { %2024 = vmatpush3.msra.mxu1 %v675_v3  ;;  %1990 = vmatprep.subr.mxu0 %v576_v4  ;;  %v670_v13 = vld [vmem:[#allocation13 + $0x48] sm:$0xff]  ;;  %v669_v15 = vld [vmem:[#allocation13 + $0x40] sm:$0xff]  ;;  %v668_v17 = vld [vmem:[#allocation13 + $0x38] sm:$0xff] }
  0xc1   : > { %2025 = vmatprep.subr.mxu1 %v674_v5  ;;  %1991 = vmatpush3.msra.mxu0 %v576_v4  ;;  %v569_v18 = vld [vmem:[#allocation12 + $0x30] sm:$0xff]  ;;  %v568_v20 = vld [vmem:[#allocation12 + $0x28] sm:$0xff]  ;;  %v567_v22 = vld [vmem:[#allocation12 + $0x20] sm:$0xff] }
  0xc2   : > { %2026 = vmatpush3.msra.mxu1 %v674_v5  ;;  %1992 = vmatprep.subr.mxu0 %v575_v6  ;;  %v667_v19 = vld [vmem:[#allocation13 + $0x30] sm:$0xff]  ;;  %v666_v21 = vld [vmem:[#allocation13 + $0x28] sm:$0xff]  ;;  %v665_v23 = vld [vmem:[#allocation13 + $0x20] sm:$0xff] }
  0xc3   : > { %2027 = vmatprep.subr.mxu1 %v673_v7  ;;  %1993 = vmatpush3.msra.mxu0 %v575_v6  ;;  %v566_v24 = vld [vmem:[#allocation12 + $0x18] sm:$0xff]  ;;  %v565_v26 = vld [vmem:[#allocation12 + $0x10] sm:$0xff]  ;;  %v564_v28 = vld [vmem:[#allocation12 + $0x8] sm:$0xff] }
  0xc4   : > { %2028 = vmatpush3.msra.mxu1 %v673_v7  ;;  %1994 = vmatprep.subr.mxu0 %v574_v8  ;;  %v664_v25 = vld [vmem:[#allocation13 + $0x18] sm:$0xff]  ;;  %v663_v27 = vld [vmem:[#allocation13 + $0x10] sm:$0xff]  ;;  %v662_v29 = vld [vmem:[#allocation13 + $0x8] sm:$0xff] }
  0xc5   : > { %2029 = vmatprep.subr.mxu1 %v672_v9  ;;  %1995 = vmatpush3.msra.mxu0 %v574_v8  ;;  %v563_v30 = vld [vmem:[#allocation12] sm:$0xff]  ;;  %v560_v34 = vld [vmem:[%s481_s9 + $0x8] sm:$0xff]  ;;  %v1865_v36 = vld [vmem:[%s3358_s1] ss:$0 sm:$0xff] }
  0xc6   : > { %2030 = vmatpush3.msra.mxu1 %v672_v9  ;;  %1996 = vmatprep.subr.mxu0 %v573_v10  ;;  %v661_v31 = vld [vmem:[#allocation13] sm:$0xff]  ;;  %v562_v35 = vld [vmem:[%s490_s12 + $0x8] sm:$0xff]  ;;  %v1866_v37 = vld [vmem:[%s3359_s6] ss:$0 sm:$0xff] }
  0xc7   : > { %2031 = vmatprep.subr.mxu1 %v671_v11  ;;  %1997 = vmatpush3.msra.mxu0 %v573_v10  ;;  %v559_v32 = vld [vmem:[%s481_s9] sm:$0xff] }
  0xc8   : > { %2032 = vmatpush3.msra.mxu1 %v671_v11  ;;  %1998 = vmatprep.subr.mxu0 %v572_v12  ;;  %v561_v33 = vld [vmem:[%s490_s12] sm:$0xff] }
  0xc9   : > { %2033 = vmatprep.subr.mxu1 %v670_v13  ;;  %1999 = vmatpush3.msra.mxu0 %v572_v12 }
  0xca   : > { %2034 = vmatpush3.msra.mxu1 %v670_v13  ;;  %2000 = vmatprep.subr.mxu0 %v571_v14 }
  0xcb   : > { %2035 = vmatprep.subr.mxu1 %v669_v15  ;;  %2001 = vmatpush3.msra.mxu0 %v571_v14 }
  0xcc   : > { %2036 = vmatpush3.msra.mxu1 %v669_v15  ;;  %2002 = vmatprep.subr.mxu0 %v570_v16 }
  0xcd   : > { %2037 = vmatprep.subr.mxu1 %v668_v17  ;;  %2003 = vmatpush3.msra.mxu0 %v570_v16 }
  0xce   : > { %2038 = vmatpush3.msra.mxu1 %v668_v17  ;;  %2004 = vmatprep.subr.mxu0 %v569_v18 }
  0xcf   : > { %2039 = vmatprep.subr.mxu1 %v667_v19  ;;  %2005 = vmatpush3.msra.mxu0 %v569_v18 }
  0xd0   : > { %2040 = vmatpush3.msra.mxu1 %v667_v19  ;;  %2006 = vmatprep.subr.mxu0 %v568_v20 }
  0xd1   : > { %2041 = vmatprep.subr.mxu1 %v666_v21  ;;  %2007 = vmatpush3.msra.mxu0 %v568_v20 }
  0xd2   : > { %2042 = vmatpush3.msra.mxu1 %v666_v21  ;;  %2008 = vmatprep.subr.mxu0 %v567_v22 }
  0xd3   : > { %2043 = vmatprep.subr.mxu1 %v665_v23  ;;  %2009 = vmatpush3.msra.mxu0 %v567_v22 }
  0xd4   : > { %2044 = vmatpush3.msra.mxu1 %v665_v23  ;;  %2010 = vmatprep.subr.mxu0 %v566_v24 }
  0xd5   : > { %2045 = vmatprep.subr.mxu1 %v664_v25  ;;  %2011 = vmatpush3.msra.mxu0 %v566_v24 }
  0xd6   : > { %2046 = vmatpush3.msra.mxu1 %v664_v25  ;;  %2012 = vmatprep.subr.mxu0 %v565_v26 }
  0xd7   : > { %2047 = vmatprep.subr.mxu1 %v663_v27  ;;  %2013 = vmatpush3.msra.mxu0 %v565_v26 }
  0xd8   : > { %2048 = vmatpush3.msra.mxu1 %v663_v27  ;;  %2014 = vmatprep.subr.mxu0 %v564_v28 }
  0xd9   : > { %2049 = vmatprep.subr.mxu1 %v662_v29  ;;  %2015 = vmatpush3.msra.mxu0 %v564_v28 }
  0xda   : > { %2050 = vmatpush3.msra.mxu1 %v662_v29  ;;  %2016 = vmatprep.subr.mxu0 %v563_v30 }
  0xdb   : > { %2051 = vmatprep.subr.mxu1 %v661_v31  ;;  %2017 = vmatpush3.msra.mxu0 %v563_v30 }
  0xdc   : > { %2018 = vmatprep.mubr.f32.mxu0 %v559_v32  ;;  %2052 = vmatpush3.msra.mxu1 %v661_v31 }
  0xdd   : > { %2053 = vmatprep.mubr.f32.mxu1 %v561_v33  ;;  %2019 = vmatmul.mubr.f32.vlgmr.msra.gmra.mxu0 %v560_v34 }
  0xde   : > { %2054 = vmatmul.mubr.f32.vlgmr.msra.gmra.mxu1 %v562_v35 }
 0x19d   : > { %v2020_v38 = vpop.f32.mrf.mxu0 }
 0x19e   : > { %v2055_v39 = vpop.f32.mrf.mxu1  ;;  %v658_v40 = vadd.f32 %v2020_v38, %v1865_v36 }
 0x19f   : > { %v756_v41 = vadd.f32 %v2055_v39, %v1866_v37  ;;  %v652_v42 = vpop.f32.mrf.mxu0 }
 0x1a0   : > { %v750_v43 = vpop.f32.mrf.mxu1  ;;  %760 = vst [vmem:[#allocation2 + $0x8] sm:$0xff] %v658_v40  ;;  %v653_v44 = vadd.f32 %v1865_v36, %v652_v42 }
 0x1a1   : > { %762 = vst [vmem:[#allocation3] sm:$0xff] %v756_v41  ;;  %v751_v45 = vadd.f32 %v1866_v37, %v750_v43 }
 0x1a2   : > { %759 = vst [vmem:[#allocation2] sm:$0xff] %v653_v44 }
 0x1a3   : > { %761 = vst [vmem:[#allocation3 + $0x8] sm:$0xff] %v751_v45 }
 0x1a4 PF: > { %v779_v46 = vld [vmem:[#allocation10 + $0x78] sm:$0xff]  ;;  %v2689_v47 = vmov 0.0   ;;  %v778_v48 = vld [vmem:[#allocation10 + $0x70] sm:$0xff]  ;;  %vm2690_vm0 = vmmov 0   ;;  %v777_v49 = vld [vmem:[#allocation10 + $0x68] sm:$0xff]  ;;  %vm862_vm1 = vcmask 261120  }
 0x1a5   : > { %2056 = vmatprep.subr.mxu0 %v2689_v47  ;;  %2088 = vmatprep.mubr.msk.f32.mxu0 %vm2690_vm0, %v2689_v47  ;;  %v776_v50 = vld [vmem:[#allocation10 + $0x60] sm:$0xff]  ;;  %v775_v52 = vld [vmem:[#allocation10 + $0x58] sm:$0xff]  ;;  %v774_v53 = vld [vmem:[#allocation10 + $0x50] sm:$0xff]  ;;  %s3360_s4 = sld [smem:[#allocation34_spill]]  ;;  %vm942_vm2 = vcmask 130048   ;;  %s2692_s20 = smov 64  }
 0x1a6   : > { %2057 = vmatpush3.msra.mxu0 %v779_v46  ;;  %2091 = vmatprep.subr.mxu1 %v2689_v47  ;;  %v773_v54 = vld [vmem:[#allocation10 + $0x48] sm:$0xff]  ;;  %v772_v55 = vld [vmem:[#allocation10 + $0x40] sm:$0xff]  ;;  %v771_v56 = vld [vmem:[#allocation10 + $0x38] sm:$0xff]  ;;  %s2693_s8 = smov 32   ;;  %s3361_s7 = sld [smem:[#allocation25_spill]]  ;;  %vm1558_vm3 = vcmask 523264  }
 0x1a7   : > { %2058 = vmatprep.subr.mxu0 %v2689_v47  ;;  %2095 = vmatprep.mubr.msk.f32.mxu1 %vm2690_vm0, %v2689_v47  ;;  %v3072_v51 = vld [vmem:[#allocation2 + $0x8] sm:$0xff]  ;;  %v770_v57 = vld [vmem:[#allocation10 + $0x30] sm:$0xff]  ;;  %v769_v58 = vld [vmem:[#allocation10 + $0x28] sm:$0xff]  ;;  %s3362_s29 = sld [smem:[#allocation24_spill]]  ;;  %vm1560_vm4 = vcmask 785408   ;;  %s1672_s1 = sshll.u32 %s3047_s24, 4  ;;  %s1673_s1 = int_to_ptr.vmem [resolvable:$true] %s1672_s1 }
 0x1a8   : > { %2059 = vmatpush3.msra.mxu0 %v778_v48  ;;  %2092 = vmatpush3.xpose.msk.msra.mxu1 %vm862_vm1, %v3072_v51  ;;  %v768_v59 = vld [vmem:[#allocation10 + $0x20] sm:$0xff]  ;;  %v767_v60 = vld [vmem:[#allocation10 + $0x18] sm:$0xff]  ;;  %v766_v61 = vld [vmem:[#allocation10 + $0x10] sm:$0xff]  ;;  %s3363_s3 = sld [smem:[#allocation30_spill]]  ;;  %s1657_s10 = scalar_lea.sflag [#allocation6], %s3019_s23 }
 0x1a9   : > { %2060 = vmatprep.subr.mxu0 %v2689_v47  ;;  %2093 = vmatprep.subr.mxu1 %v2689_v47  ;;  %v765_v62 = vld [vmem:[#allocation10 + $0x8] sm:$0xff]  ;;  %v764_v63 = vld [vmem:[#allocation10] sm:$0xff]  ;;  %v763_v0 = vld [vmem:[%s3023_s17] sm:$0xff]  ;;  %s2691_s17 = smov 96   ;;  %s3364_s28 = sld [smem:[#allocation40_spill]] }
 0x1aa   : > { %2061 = vmatpush3.msra.mxu0 %v777_v49  ;;  %v3094_v1 = vld [vmem:[#allocation2] sm:$0xff]  ;;  %1031 = vrot.lane.b32.xlu1 %v3072_v51, %s2691_s17  ;;  %v3114_v15 = vld [vmem:[#allocation3] sm:$0xff]  ;;  %v3116_v16 = vld [vmem:[#allocation3 + $0x8] sm:$0xff]  ;;  %s3365_s6 = sld [smem:[#allocation41_spill]] }
 0x1ab   : > { %2062 = vmatprep.subr.mxu0 %v2689_v47  ;;  %v1867_v2 = vld [vmem:[%s3360_s4] ss:$0 sm:$0xff]  ;;  %s2546_s4 = scalar_lea.vmem %s1673_s1, 128 }
 0x1ac   : > { %2063 = vmatpush3.msra.mxu0 %v776_v50  ;;  %2094 = vmatpush3.xpose.msk.msra.mxu1 %vm862_vm1, %v3094_v1  ;;  %s1886_s16 = sshll.u32 %s3361_s7, 1  ;;  %p2547_p5 = scmp.ne.s32.totalorder %s1673_s1, %s2546_s4 }
 0x1ad   : > { %2064 = vmatprep.subr.mxu0 %v2689_v47  ;;  %2098 = vmatprep.subr.mxu1 %v2689_v47  ;;  %s1668_s9 = sadd.s32 %s3362_s29, %s1886_s16 }
 0x1ae   : > { %2065 = vmatpush3.msra.mxu0 %v775_v52  ;;  %1029 = vrot.lane.b32.xlu1 %v3094_v1, %s2691_s17  ;;  %s1887_s18 = sshll.u32 %s1668_s9, 7  ;;  %p3366_p4 = scmp.ne.s32.totalorder %s3363_s3, 0 }
 0x1af   : > { %2066 = vmatprep.subr.mxu0 %v2689_v47 }
 0x1b0   : > { %2067 = vmatpush3.msra.mxu0 %v774_v53  ;;  %s3221_s11 = scalar_lea.hbm %s3365_s6, %s1887_s18  ;;  %p2548_p12 = pnand %p2547_p5, %p3366_p4 }
 0x1b1   : > { %2068 = vmatprep.subr.mxu0 %v2689_v47 }
 0x1b2   : > { %2069 = vmatpush3.msra.mxu0 %v773_v54  ;;  %p2549_p0 = pneg %p2548_p12 }
 0x1b3   : > { %2070 = vmatprep.subr.mxu0 %v2689_v47 }
 0x1b4   : > { %2071 = vmatpush3.msra.mxu0 %v772_v55 }
 0x1b5   : > { %2072 = vmatprep.subr.mxu0 %v2689_v47 }
 0x1b6   : > { %2073 = vmatpush3.msra.mxu0 %v771_v56 }
 0x1b7   : > { %2074 = vmatprep.subr.mxu0 %v2689_v47 }
 0x1b8   : > { %2075 = vmatpush3.msra.mxu0 %v770_v57 }
 0x1b9   : > { %2076 = vmatprep.subr.mxu0 %v2689_v47 }
 0x1ba   : > { %2077 = vmatpush3.msra.mxu0 %v769_v58 }
 0x1bb   : > { %2078 = vmatprep.subr.mxu0 %v2689_v47 }
 0x1bc   : > { %2079 = vmatpush3.msra.mxu0 %v768_v59 }
 0x1bd   : > { %2080 = vmatprep.subr.mxu0 %v2689_v47 }
 0x1be   : > { %2081 = vmatpush3.msra.mxu0 %v767_v60 }
 0x1bf   : > { %2082 = vmatprep.subr.mxu0 %v2689_v47 }
 0x1c0   : > { %2083 = vmatpush3.msra.mxu0 %v766_v61 }
 0x1c1   : > { %2084 = vmatprep.subr.mxu0 %v2689_v47 }
 0x1c2   : > { %2085 = vmatpush3.msra.mxu0 %v765_v62 }
 0x1c3   : > { %2086 = vmatprep.subr.mxu0 %v2689_v47 }
 0x1c4   : > { %2087 = vmatpush3.msra.mxu0 %v764_v63 }
 0x1c5   : > { %2089 = vmatmul.mubr.f32.vlgmr.msra.gmra.mxu0 %v763_v0  ;;  %2147 = vmatprep.subr.mxu0 %v2689_v47 }
 0x1c6   : > { %2179 = vmatprep.mubr.msk.f32.mxu0 %vm2690_vm0, %v2689_v47 }
 0x21c   : > { %v1032_v18 = vpop.permute.xlu1 %1031 }
 0x220   : > { %v1030_v21 = vpop.permute.xlu1 %1029 }
 0x285   : > { %v853_v3 = vpop.f32.mrf.mxu0 }
 0x286   : > { %v854_v4 = vadd.f32 %v1867_v2, %v853_v3 }
 0x287   : > { %v2090_v5 = vpop.f32.mrf.mxu0 }
 0x288   : > { %v3102_v6 = vmul.f32 0.17677669, %v854_v4 }
 0x28a   : > { %2096 = vmatmul.mubr.msk.f32.vlgmr.msra.gmra.mxu1 %vm862_vm1, %v3102_v6 }
 0x28b   : > { %2102 = vmatprep.mubr.msk.f32.mxu1 %vm2690_vm0, %v2689_v47  ;;  %2099 = vmatpush3.msra.mxu1 %v3114_v15 }
 0x28c   : > { %2100 = vmatprep.subr.mxu1 %v2689_v47 }
 0x28d   : > { %2101 = vmatpush3.msra.mxu1 %v3116_v16 }
 0x28e   : > { %2105 = vmatprep.subr.mxu1 %v2689_v47 }
 0x34a   : > { %v938_v7 = vpop.f32.mrf.mxu1 }
 0x34b   : > { %v943_v8 = vsel %vm942_vm2, %v938_v7, -inf }
 0x34c   : > { %944 = vmax.xlane.f32.xlu0 %v943_v8  ;;  %v2097_v9 = vpop.f32.mrf.mxu1 }
 0x3d5   : > { %v945_v10 = vpop.xlane.xlu0 %944 }
 0x3d6   : > { %v946_v11 = vsub.f32 %v938_v7, %v945_v10 }
 0x3d8   : > { %v947_v12 = vmul.f32 1.442695, %v946_v11  ;;  %v1577_v11 = vld [vmem:[#allocation15 + $0x78] sm:$0xff] }
 0x3d9   : > { %2148 = vmatpush3.msra.mxu0 %v1577_v11 }
 0x3da   : > { %2342 = vpow2.f32 %v947_v12  ;;  %v1576_v12 = vld [vmem:[#allocation15 + $0x70] sm:$0xff]  ;;  %2149 = vmatprep.subr.mxu0 %v2689_v47 }
 0x3db   : > { %2150 = vmatpush3.msra.mxu0 %v1576_v12 }
 0x3dc   : > { %2151 = vmatprep.subr.mxu0 %v2689_v47 }
 0x3e7   : > { %v2343_v13 = vpop.eup %2342 }
 0x3e8   : > { %v949_v14 = vsel %vm942_vm2, %v2343_v13, 0.0 }
 0x3e9   : > { %950 = vadd.xlane.f32.xlu0 %v949_v14  ;;  %v1574_v14 = vld [vmem:[#allocation15 + $0x60] sm:$0xff] }
 0x3ff   : > { %1027 = vrot.lane.b32.xlu0 %v3102_v6, %s2691_s17 }
 0x472   : > { %v951_v17 = vpop.xlane.xlu0 %950 }
 0x473   : > { %2344 = vrcp.f32 %v951_v17  ;;  %v1571_v17 = vld [vmem:[#allocation15 + $0x48] sm:$0xff] }
 0x476   : > { %v1028_v22 = vpop.permute.xlu0 %1027 }
 0x480   : > { %v2345_v19 = vpop.eup %2344 }
 0x481   : > { %v953_v20 = vmul.f32 %v2345_v19, %v2343_v13  ;;  %v1575_v13 = vld [vmem:[#allocation15 + $0x68] sm:$0xff]  ;;  %v1569_v19 = vld [vmem:[#allocation15 + $0x38] sm:$0xff] }
 0x482   : > { %2152 = vmatpush3.msra.mxu0 %v1575_v13 }
 0x483   : > { %2103 = vmatmul.mubr.msk.f32.vlgmr.msra.gmra.mxu1 %vm942_vm2, %v953_v20  ;;  %2153 = vmatprep.subr.mxu0 %v2689_v47  ;;  %v1568_v20 = vld [vmem:[#allocation15 + $0x30] sm:$0xff] }
 0x484   : > { %2106 = vmatpush3.xpose.msk.msra.mxu1 %vm862_vm1, %v1032_v18  ;;  %2109 = vmatprep.mubr.msk.f32.mxu1 %vm2690_vm0, %v2689_v47  ;;  %v1570_v18 = vld [vmem:[#allocation15 + $0x40] sm:$0xff] }
 0x485   : > { %2107 = vmatprep.subr.mxu1 %v2689_v47  ;;  %2154 = vmatpush3.msra.mxu0 %v1574_v14 }
 0x486   : > { %2155 = vmatprep.subr.mxu0 %v2689_v47 }
 0x488   : > { %2108 = vmatpush3.xpose.msk.msra.mxu1 %vm862_vm1, %v1030_v21  ;;  %v1567_v21 = vld [vmem:[#allocation15 + $0x28] sm:$0xff] }
 0x489   : > { %2112 = vmatprep.subr.mxu1 %v2689_v47 }
 0x48b   : > { %2110 = vmatmul.mubr.msk.f32.vlgmr.msra.gmra.mxu1 %vm862_vm1, %v1028_v22  ;;  %v1566_v22 = vld [vmem:[#allocation15 + $0x20] sm:$0xff] }
 0x48c   : > { %2116 = vmatprep.mubr.msk.f32.mxu1 %vm2690_vm0, %v2689_v47 }
 0x543   : > { %v3134_v23 = vpop.f32.mrf.mxu1 }
 0x545   : > { %v2104_v24 = vpop.f32.mrf.mxu1 }
 0x546   : > { %v1565_v24 = vld [vmem:[#allocation15 + $0x18] sm:$0xff] }
 0x54b   : > { %v1105_v25 = vpop.f32.mrf.mxu1 }
 0x54c   : > { %v1109_v26 = vsel %vm942_vm2, %v1105_v25, -inf }
 0x54d   : > { %1110 = vmax.xlane.f32.xlu1 %v1109_v26  ;;  %v2111_v27 = vpop.f32.mrf.mxu1  ;;  %v1563_v26 = vld [vmem:[#allocation15 + $0x8] sm:$0xff] }
 0x54e   : > { %v1562_v27 = vld [vmem:[#allocation15] sm:$0xff] }
 0x55e   : > { %1124 = vrot.lane.b32.xlu1 %v3114_v15, %s2691_s17 }
 0x562   : > { %1205 = vrot.lane.b32.xlu1 %v3072_v51, %s2692_s20 }
 0x566   : > { %1203 = vrot.lane.b32.xlu1 %v3094_v1, %s2692_s20 }
 0x56a   : > { %1201 = vrot.lane.b32.xlu1 %v3102_v6, %s2692_s20 }
 0x5d6   : > { %v1111_v28 = vpop.xlane.xlu1 %1110 }
 0x5d7   : > { %v1112_v29 = vsub.f32 %v1105_v25, %v1111_v28  ;;  %v1564_v25 = vld [vmem:[#allocation15 + $0x10] sm:$0xff] }
 0x5d9   : > { %v1113_v30 = vmul.f32 1.442695, %v1112_v29 }
 0x5da   : > { %v1125_v31 = vpop.permute.xlu1 %1124 }
 0x5db   : > { %2346 = vpow2.f32 %v1113_v30  ;;  %2113 = vmatpush3.msra.mxu1 %v1125_v31 }
 0x5dc   : > { %2114 = vmatprep.subr.mxu1 %v2689_v47 }
 0x5de   : > { %v1206_v36 = vpop.permute.xlu1 %1205 }
 0x5e2   : > { %v1204_v39 = vpop.permute.xlu1 %1203 }
 0x5e6   : > { %v1202_v40 = vpop.permute.xlu1 %1201 }
 0x5e8   : > { %v2347_v32 = vpop.eup %2346 }
 0x5e9   : > { %v1115_v33 = vsel %vm942_vm2, %v2347_v32, 0.0 }
 0x5ea   : > { %1116 = vadd.xlane.f32.xlu0 %v1115_v33 }
 0x600   : > { %1122 = vrot.lane.b32.xlu0 %v3116_v16, %s2691_s17 }
 0x673   : > { %v1117_v34 = vpop.xlane.xlu0 %1116 }
 0x674   : > { %2348 = vrcp.f32 %v1117_v34 }
 0x677   : > { %v1123_v35 = vpop.permute.xlu0 %1122 }
 0x678   : > { %2115 = vmatpush3.msra.mxu1 %v1123_v35  ;;  %v1884_v35 = vld [vmem:[%s3364_s28] ss:$0 sm:$0xff] }
 0x679   : > { %2119 = vmatprep.subr.mxu1 %v2689_v47 }
 0x681   : > { %v2349_v37 = vpop.eup %2348 }
 0x682   : > { %v1119_v38 = vmul.f32 %v2349_v37, %v2347_v32 }
 0x684   : > { %2117 = vmatmul.mubr.msk.f32.vlgmr.msra.gmra.mxu1 %vm942_vm2, %v1119_v38 }
 0x685   : > { %2120 = vmatpush3.xpose.msk.msra.mxu1 %vm862_vm1, %v1206_v36  ;;  %2123 = vmatprep.mubr.msk.f32.mxu1 %vm2690_vm0, %v2689_v47 }
 0x686   : > { %2121 = vmatprep.subr.mxu1 %v2689_v47 }
 0x689   : > { %2122 = vmatpush3.xpose.msk.msra.mxu1 %vm862_vm1, %v1204_v39 }
 0x68a   : > { %2126 = vmatprep.subr.mxu1 %v2689_v47 }
 0x68c   : > { %2124 = vmatmul.mubr.msk.f32.vlgmr.msra.gmra.mxu1 %vm862_vm1, %v1202_v40 }
 0x68d   : > { %2130 = vmatprep.mubr.msk.f32.mxu1 %vm2690_vm0, %v2689_v47 }
 0x744   : > { %v1197_v41 = vpop.f32.mrf.mxu1 }
 0x746   : > { %v2118_v42 = vpop.f32.mrf.mxu1 }
 0x74c   : > { %v1279_v43 = vpop.f32.mrf.mxu1 }
 0x74d   : > { %v1283_v44 = vsel %vm942_vm2, %v1279_v43, -inf }
 0x74e   : > { %1284 = vmax.xlane.f32.xlu1 %v1283_v44  ;;  %v2125_v45 = vpop.f32.mrf.mxu1 }
 0x75f   : > { %1296 = vrot.lane.b32.xlu1 %v3114_v15, %s2692_s20 }
 0x763   : > { %1377 = vrot.lane.b32.xlu1 %v3072_v51, %s2693_s8 }
 0x767   : > { %1375 = vrot.lane.b32.xlu1 %v3094_v1, %s2693_s8 }
 0x76b   : > { %1373 = vrot.lane.b32.xlu1 %v3102_v6, %s2693_s8 }
 0x7d7   : > { %v1285_v46 = vpop.xlane.xlu1 %1284 }
 0x7d8   : > { %v1286_v48 = vsub.f32 %v1279_v43, %v1285_v46 }
 0x7da   : > { %v1287_v49 = vmul.f32 1.442695, %v1286_v48 }
 0x7db   : > { %v1297_v50 = vpop.permute.xlu1 %1296 }
 0x7dc   : > { %2350 = vpow2.f32 %v1287_v49  ;;  %2127 = vmatpush3.msra.mxu1 %v1297_v50 }
 0x7dd   : > { %2128 = vmatprep.subr.mxu1 %v2689_v47 }
 0x7df   : > { %v1378_v55 = vpop.permute.xlu1 %1377 }
 0x7e3   : > { %v1376_v58 = vpop.permute.xlu1 %1375 }
 0x7e7   : > { %v1374_v59 = vpop.permute.xlu1 %1373 }
 0x7e9   : > { %v2351_v52 = vpop.eup %2350 }
 0x7ea   : > { %v1289_v53 = vsel %vm942_vm2, %v2351_v52, 0.0 }
 0x7eb   : > { %1290 = vadd.xlane.f32.xlu0 %v1289_v53 }
 0x801   : > { %1294 = vrot.lane.b32.xlu0 %v3116_v16, %s2692_s20 }
 0x874   : > { %v1291_v51 = vpop.xlane.xlu0 %1290 }
 0x875   : > { %2352 = vrcp.f32 %v1291_v51 }
 0x878   : > { %v1295_v54 = vpop.permute.xlu0 %1294 }
 0x879   : > { %2129 = vmatpush3.msra.mxu1 %v1295_v54 }
 0x87a   : > { %2133 = vmatprep.subr.mxu1 %v2689_v47 }
 0x882   : > { %v2353_v56 = vpop.eup %2352 }
 0x883   : > { %v1293_v57 = vmul.f32 %v2353_v56, %v2351_v52 }
 0x885   : > { %2131 = vmatmul.mubr.msk.f32.vlgmr.msra.gmra.mxu1 %vm942_vm2, %v1293_v57 }
 0x886   : > { %2134 = vmatpush3.xpose.msk.msra.mxu1 %vm862_vm1, %v1378_v55  ;;  %2137 = vmatprep.mubr.msk.f32.mxu1 %vm2690_vm0, %v2689_v47 }
 0x887   : > { %2135 = vmatprep.subr.mxu1 %v2689_v47 }
 0x88a   : > { %2136 = vmatpush3.xpose.msk.msra.mxu1 %vm862_vm1, %v1376_v58 }
 0x88b   : > { %2140 = vmatprep.subr.mxu1 %v2689_v47 }
 0x88d   : > { %2138 = vmatmul.mubr.msk.f32.vlgmr.msra.gmra.mxu1 %vm862_vm1, %v1374_v59 }
 0x88e   : > { %2144 = vmatprep.mubr.msk.f32.mxu1 %vm2690_vm0, %v2689_v47 }
 0x945   : > { %v1369_v60 = vpop.f32.mrf.mxu1 }
 0x947   : > { %v2132_v61 = vpop.f32.mrf.mxu1 }
 0x94d   : > { %v1451_v62 = vpop.f32.mrf.mxu1 }
 0x94e   : > { %v1455_v63 = vsel %vm942_vm2, %v1451_v62, -inf }
 0x94f   : > { %1456 = vmax.xlane.f32.xlu0 %v1455_v63  ;;  %v2139_v0 = vpop.f32.mrf.mxu1 }
 0x965   : > { %1468 = vrot.lane.b32.xlu0 %v3114_v15, %s2693_s8  ;;  %v1573_v15 = vld [vmem:[#allocation15 + $0x58] sm:$0xff] }
 0x966   : > { %2156 = vmatpush3.msra.mxu0 %v1573_v15 }
 0x967   : > { %2157 = vmatprep.subr.mxu0 %v2689_v47 }
 0x969   : > { %1546 = vrot.lane.b32.xlu0 %v1197_v41, %s2693_s8 }
 0x9d8   : > { %v1457_v1 = vpop.xlane.xlu0 %1456 }
 0x9d9   : > { %v1458_v2 = vsub.f32 %v1451_v62, %v1457_v1 }
 0x9db   : > { %v1459_v3 = vmul.f32 1.442695, %v1458_v2 }
 0x9dc   : > { %v1469_v4 = vpop.permute.xlu0 %1468 }
 0x9dd   : > { %2354 = vpow2.f32 %v1459_v3  ;;  %2141 = vmatpush3.msra.mxu1 %v1469_v4 }
 0x9de   : > { %2142 = vmatprep.subr.mxu1 %v2689_v47 }
 0x9e0   : > { %v1547_v30 = vpop.permute.xlu0 %1546 }
 0x9e1   : > { %v1557_v32 = vsel %vm862_vm1, %v3134_v23, %v1547_v30 }
 0x9ea   : > { %v2355_v5 = vpop.eup %2354 }
 0x9eb   : > { %v1461_v6 = vsel %vm942_vm2, %v2355_v5, 0.0 }
 0x9ec   : > { %1462 = vadd.xlane.f32.xlu1 %v1461_v6 }
 0x9fd   : > { %1466 = vrot.lane.b32.xlu1 %v3116_v16, %s2693_s8  ;;  %v1572_v16 = vld [vmem:[#allocation15 + $0x50] sm:$0xff] }
 0x9fe   : > { %2158 = vmatpush3.msra.mxu0 %v1572_v16 }
 0x9ff   : > { %2159 = vmatprep.subr.mxu0 %v2689_v47 }
 0xa00   : > { %2160 = vmatpush3.msra.mxu0 %v1571_v17 }
 0xa01   : > { %1550 = vrot.lane.b32.xlu1 %v1369_v60, %s2692_s20  ;;  %2161 = vmatprep.subr.mxu0 %v2689_v47 }
 0xa02   : > { %2162 = vmatpush3.msra.mxu0 %v1570_v18 }
 0xa03   : > { %2163 = vmatprep.subr.mxu0 %v2689_v47 }
 0xa04   : > { %2164 = vmatpush3.msra.mxu0 %v1569_v19 }
 0xa05   : > { %2165 = vmatprep.subr.mxu0 %v2689_v47 }
 0xa06   : > { %2166 = vmatpush3.msra.mxu0 %v1568_v20 }
 0xa07   : > { %2167 = vmatprep.subr.mxu0 %v2689_v47 }
 0xa08   : > { %2168 = vmatpush3.msra.mxu0 %v1567_v21 }
 0xa09   : > { %2169 = vmatprep.subr.mxu0 %v2689_v47 }
 0xa0a   : > { %2170 = vmatpush3.msra.mxu0 %v1566_v22 }
 0xa0b   : > { %2171 = vmatprep.subr.mxu0 %v2689_v47 }
 0xa0c   : > { %2172 = vmatpush3.msra.mxu0 %v1565_v24 }
 0xa0d   : > { %2173 = vmatprep.subr.mxu0 %v2689_v47 }
 0xa0e   : > { %2174 = vmatpush3.msra.mxu0 %v1564_v25 }
 0xa0f   : > { %2175 = vmatprep.subr.mxu0 %v2689_v47 }
 0xa10   : > { %2176 = vmatpush3.msra.mxu0 %v1563_v26 }
 0xa11   : > { %2177 = vmatprep.subr.mxu0 %v2689_v47 }
 0xa12   : > { %2178 = vmatpush3.msra.mxu0 %v1562_v27 }
 0xa75   : > { %v1463_v7 = vpop.xlane.xlu1 %1462 }
 0xa76   : > { %2356 = vrcp.f32 %v1463_v7 }
 0xa79   : > { %v1467_v8 = vpop.permute.xlu1 %1466 }
 0xa7a   : > { %2143 = vmatpush3.msra.mxu1 %v1467_v8 }
 0xa7d   : > { %v1551_v31 = vpop.permute.xlu1 %1550 }
 0xa7e   : > { %v1559_v33 = vsel %vm1558_vm3, %v1557_v32, %v1551_v31 }
 0xa83   : > { %v2357_v9 = vpop.eup %2356 }
 0xa84   : > { %v1465_v10 = vmul.f32 %v2357_v9, %v2355_v5 }
 0xa86   : > { %2145 = vmatmul.mubr.msk.f32.vlgmr.msra.gmra.mxu1 %vm942_vm2, %v1465_v10 }
 0xb46   : > { %v1541_v28 = vpop.f32.mrf.mxu1 }
 0xb47   : > { %1554 = vrot.lane.b32.xlu0 %v1541_v28, %s2691_s17  ;;  %s2694_s17 = smov [#allocation16]  }
 0xb48   : > { %v2146_v29 = vpop.f32.mrf.mxu1  ;;  %s2550_s20 = sshll.u32 %s2694_s17, 4  ;;  %s2551_s20 = int_to_ptr.vmem [resolvable:$false] %s2550_s20 }
 0xb49   : > { %s2552_s8 = scalar_lea.vmem %s2551_s20, 256  ;;  %p2553_p8 = scmp.lt.s32.totalorder %s1673_s1, %s2551_s20 }
 0xb4a   : > { %p2554_p1 = scmp.lt.s32.totalorder %s2552_s8, %s2546_s4 }
 0xb4c   : > { %p2555_p9 = por %p2554_p1, %p2553_p8 }
 0xb4e   : > { %p2556_p11 = pnand %p2555_p9, %p2549_p0 }
 0xbb9   : > { %v1555_v34 = vpop.permute.xlu0 %1554 }
 0xbba   : > { %v1561_v47 = vsel %vm1560_vm4, %v1559_v33, %v1555_v34 }
 0xbbb   : > { %2180 = vmatmul.mubr.f32.vlgmr.msra.gmra.mxu0 %v1561_v47 }
 0xc7b   : > { %v1651_v36 = vpop.f32.mrf.mxu0 }
 0xc7c   : > { %v1652_v37 = vadd.f32 %v1884_v35, %v1651_v36 }
 0xc7d   : > { %v2181_v23 = vpop.f32.mrf.mxu0 }
 0xc7e   : > { %1655 = vst [vmem:[%s3047_s24] sm:$0xff] %v1652_v37 }
 0xc7f   : > { %2559 = shalt.err (!%p2556_p11)
}
 0xc80   : > { %s2560_s24 = scalar_lea.hbm %s3221_s11, 128  ;;  %s2564_s29 = scalar_lea.hbm %s3365_s6, 512 }
 0xc81   : > { %p2561_p3 = scmp.ne.s32.totalorder %s3221_s11, %s2560_s24  ;;  %p2565_p2 = scmp.lt.s32.totalorder %s3221_s11, %s3365_s6 }
 0xc82   : > { %p2566_p13 = scmp.lt.s32.totalorder %s2564_s29, %s2560_s24 }
 0xc83   : > { %p2562_p7 = pnand %p2561_p3, %p3366_p4 }
 0xc84   : > { %p2567_p6 = por %p2566_p13, %p2565_p2 }
 0xc85   : > { %p2563_p10 = pneg %p2562_p7 }
 0xc87   : > { %p2568_p5 = pnand %p2567_p6, %p2563_p10 }
 0xc89   : > { %2571 = shalt.err (!%p2568_p5)
}
 0xc8a   : > { %2204 = dma.vmem_to_hbm [thread:$0]  (%p3366_p4), %s1673_s1, 128, %s3221_s11, %s1657_s10  }
 0xc8b PF: > { %s3367_s12 = sld [smem:[#allocation23_spill]]  ;;  %p2242_p12 = scmp.ge.s32.totalorder %s2678_s27, 2 }
 0xc8c   : > { %p3368_p0 = scmp.ne.s32.totalorder %s3345_s30, 0 }
 0xc8e   : > { %p2230_p8 = pnand %p2242_p12, %p3368_p0 }
 0xc90   : > { %p2231_p1 = pneg %p2230_p8 }
 0xc91   : > { %s1684_s14 = sand.u32 1, %s3367_s12  }
 0xc92   : > { %s1685_s28 = scalar_lea.sflag [#allocation6], %s1684_s14 }
 0xc93   : > { %2633 = dma.done.wait (%p2231_p1), %s1685_s28, 128  }
 0xc94   : > { %2635 = vsyncadd (%p2231_p1), %s1685_s28, 4294967168  ;;  %s32_s27 = sadd.s32 1, %s2678_s27   ;;  %s3369_s17 = sld [smem:[#allocation22_spill]] }
 0xc95   : > { %p29_p9 = scmp.ge.s32.totalorder %s32_s27, 6   ;;  %s3370_s3 = sld [smem:[#allocation28_spill]] }
 0xc96   : > { %s3371_s1 = sld [smem:[#allocation29_spill]]  ;;  %s3372_s18 = smov %s2646_s19 }
 0xc97   : > { %s3373_s19 = smov %s2967_s2  ;;  %s3374_s20 = smov %s2654_s21 }
 0xc98   : > { %s3375_s21 = smov %s2658_s22  ;;  %s3376_s22 = smov %s2970_s5 }
 0xc99   : > { %s3377_s23 = smov %s2670_s25  ;;  %s3378_s24 = smov %s2674_s26 }
 0xc9a   :  { %31 = sbr.rel (!%p29_p9) target bundleno = 25 (0x19), region = 153 }
 0xc9b   : > { %s3379_s25 = smov %s3370_s3 }
 0xc9c   : > { %s3380_s26 = smov %s3371_s1 }
 0xc9f   :  { %1690 = vsyncpa [#allocation5], 1 }
 0xca0   :  { %1692 = vsyncpa [#allocation5 + $0x1], 1 }
 0xca1   :  { %1693 = vsyncpa [#allocation8], 1 }
 0xca2   :  { %1695 = vsyncpa [#allocation8 + $0x1], 1 }
 0xca3   :  { %1696 = vsyncpa [#allocation11], 1 }
 0xca4   :  { %1697 = vsyncpa [#allocation14], 1 }
 0xca5   :  { %1698 = vsyncpa [#allocation6], 1 }
 0xca6   :  { %1700 = vsyncpa [#allocation6 + $0x1], 1 }

</bundles_post_ra>
